<compile_context>
chip_gen: v7x
topology: tpu7x:2x2x1
jax: 0.10.0
libtpu: 0.0.40
codegen_flags: <defaults>
</compile_context>

<pallas_src>
import functools

import jax
import jax.numpy as jnp
from jax.experimental import pallas as pl
from jax.experimental.pallas import tpu as pltpu

BN_EPS = 1e-5


def _vmem_limit_bytes():
    """Generation-aware scoped-VMEM limit: 3/4 of physical, capped at 96 MiB."""
    try:
        cap = pltpu.get_tpu_info().vmem_capacity_bytes
    except Exception:
        cap = 64 * 1024 * 1024  # conservative fallback (v7x physical VMEM)
    return int(min(96 * 1024 * 1024, (cap * 3) // 4))


# --------------------------------------------------------------------------- fused
def _fused_kernel(x_ref, w1_ref, b1_ref, w2_ref, b2_ref, gamma_ref, beta_ref, o_ref,
                  *, inv_n):
    """Whole module in one kernel; h lives only in vregs/VMEM."""
    x = x_ref[...]                                                   # (B, W) f32
    h = jnp.dot(x.astype(jnp.bfloat16), w1_ref[...],                 # bf16 MXU, f32 acc
                preferred_element_type=jnp.float32) + b1_ref[...]
    mean = jnp.sum(h, axis=0, keepdims=True) * inv_n                 # (1, H)
    hc = h - mean                                                    # centered (stable)
    var = jnp.sum(hc * hc, axis=0, keepdims=True) * inv_n            # biased var (torch fwd)
    scale = gamma_ref[...] * jax.lax.rsqrt(var + BN_EPS)             # rsqrt on EUP
    h_bn = hc * scale + beta_ref[...]
    y = jnp.dot(h_bn.astype(jnp.bfloat16), w2_ref[...],
                preferred_element_type=jnp.float32) + b2_ref[...]
    o_ref[...] = jnp.maximum(y, 0.0) + x                             # ReLU + residual


# ----------------------------------------------------------------------- streaming
def _fc1_stats_kernel(x_ref, w1_ref, b1_ref, stats_ref, *, inv_tb):
    """Per-tile partial BN statistics: row 0 = sum(h), row 1 = sum((h - tile_mean)^2)."""
    h = jnp.dot(x_ref[...].astype(jnp.bfloat16), w1_ref[...],
                preferred_element_type=jnp.float32) + b1_ref[...]    # (tb, H)
    tile_sum = jnp.sum(h, axis=0, keepdims=True)                     # (1, H)
    hc = h - tile_sum * inv_tb                                       # per-tile centering
    stats_ref[0:1, :] = tile_sum                                     # direct slice stores
    stats_ref[1:2, :] = jnp.sum(hc * hc, axis=0, keepdims=True)


def _bn_fc2_kernel(x_ref, w1_ref, b1_ref, scale_ref, shift_ref, w2_ref, b2_ref, o_ref):
    """Recompute fc1 per tile (no h round trip), folded BN, fc2 + ReLU + residual."""
    x = x_ref[...]                                                   # (tb, W) f32
    h = jnp.dot(x.astype(jnp.bfloat16), w1_ref[...],
                preferred_element_type=jnp.float32) + b1_ref[...]
    h_bn = h * scale_ref[...] + shift_ref[...]                       # folded BN
    y = jnp.dot(h_bn.astype(jnp.bfloat16), w2_ref[...],
                preferred_element_type=jnp.float32) + b2_ref[...]
    o_ref[...] = jnp.maximum(y, 0.0) + x


def _pick_batch_tile(batch):
    """Largest sublane-legal tile (multiple of 8) in [8, 512] that divides the batch."""
    for t in (512, 256, 128, 64, 32, 16, 8):
        if batch % t == 0:
            return t
    return None


# ------------------------------------------------------------------------- wrapper
def fc_module(x, w1, b1, w2, b2, gamma, beta, *, force_streaming=False):
    """x: (B, W) f32; w1: (W, H); b1: (1, H); w2: (H, W); b2: (1, W); gamma/beta: (1, H)."""
    B, W = x.shape
    H = w1.shape[1]
    vmem_limit = _vmem_limit_bytes()

    w1_bf = w1.astype(jnp.bfloat16)
    w2_bf = w2.astype(jnp.bfloat16)

    tb = _pick_batch_tile(B)
    # Fused working set: x + out (x2 for runtime buffering) + h + bf16 weights + vectors.
    fused_bytes = 2 * B * (2 * W + H) * 4 + 2 * (W * H * 2) + 16 * (W + H) * 4
    use_fused = (not force_streaming) and (tb is None or fused_bytes <= vmem_limit // 2)

    if use_fused:
        return pl.pallas_call(
            functools.partial(_fused_kernel, inv_n=1.0 / B),
            out_shape=jax.ShapeDtypeStruct((B, W), jnp.float32),
            compiler_params=pltpu.CompilerParams(vmem_limit_bytes=vmem_limit),
            cost_estimate=pl.CostEstimate(
                flops=4 * B * W * H + 8 * B * H + 3 * B * W,
                transcendentals=H,
                bytes_accessed=2 * B * W * 4 + 2 * W * H * 2 + (4 * H + 2 * W) * 4,
            ),
        )(x, w1_bf, b1, w2_bf, b2, gamma, beta)

    # ---------------- streaming path: batch tiles, two passes, no h round trip ----
    nb = B // tb
    cparams = pltpu.CompilerParams(
        dimension_semantics=("parallel",),
        vmem_limit_bytes=vmem_limit,
    )

    # Pass 1: per-tile partial BN statistics only (h is recomputed in pass 2).
    partial_stats = pl.pallas_call(
        functools.partial(_fc1_stats_kernel, inv_tb=1.0 / tb),
        out_shape=jax.ShapeDtypeStruct((nb, 2, H), jnp.float32),
        grid=(nb,),
        in_specs=[
            pl.BlockSpec((tb, W), lambda i: (i, 0)),          # x tile
            pl.BlockSpec((W, H), lambda i: (0, 0)),           # w1 (resident, bf16)
            pl.BlockSpec((1, H), lambda i: (0, 0)),           # b1
        ],
        out_specs=pl.BlockSpec((None, 2, H), lambda i: (i, 0, 0)),
        compiler_params=cparams,
        cost_estimate=pl.CostEstimate(
            flops=2 * B * W * H + 5 * B * H,
            transcendentals=0,
            bytes_accessed=B * W * 4 + W * H * 2 + H * 4 + nb * 2 * H * 4,
        ),
    )(x, w1_bf, b1)

    # Finalize BN statistics ONCE in plain XLA (O(nb*H)) -> (1, H) scale / shift.
    sums = partial_stats[:, 0, :]                              # (nb, H)
    m2s = partial_stats[:, 1, :]                               # (nb, H)
    mean = jnp.sum(sums, axis=0, keepdims=True) / B            # (1, H)
    tile_means = sums * (1.0 / tb)
    # Chan parallel-variance combine (numerically stable, equal tile sizes).
    m2 = jnp.sum(m2s, axis=0, keepdims=True) + tb * jnp.sum(
        jnp.square(tile_means - mean), axis=0, keepdims=True)
    var = m2 / B                                               # biased var (PyTorch fwd)
    scale = gamma * jax.lax.rsqrt(var + BN_EPS)
    shift = beta - mean * scale

    # Pass 2: recompute fc1 per tile, folded BN, fc2 + ReLU + residual.
    out = pl.pallas_call(
        _bn_fc2_kernel,
        out_shape=jax.ShapeDtypeStruct((B, W), jnp.float32),
        grid=(nb,),
        in_specs=[
            pl.BlockSpec((tb, W), lambda i: (i, 0)),           # x tile (matmul + residual)
            pl.BlockSpec((W, H), lambda i: (0, 0)),            # w1 (resident, bf16)
            pl.BlockSpec((1, H), lambda i: (0, 0)),            # b1
            pl.BlockSpec((1, H), lambda i: (0, 0)),            # scale
            pl.BlockSpec((1, H), lambda i: (0, 0)),            # shift
            pl.BlockSpec((H, W), lambda i: (0, 0)),            # w2 (resident, bf16)
            pl.BlockSpec((1, W), lambda i: (0, 0)),            # b2
        ],
        out_specs=pl.BlockSpec((tb, W), lambda i: (i, 0)),
        compiler_params=cparams,
        cost_estimate=pl.CostEstimate(
            flops=4 * B * W * H + 4 * B * H + 3 * B * W,
            transcendentals=0,
            bytes_accessed=2 * B * W * 4 + 2 * W * H * 2 + (3 * H + 2 * W) * 4,
        ),
    )(x, w1_bf, b1, scale, shift, w2_bf, b2)
    return out


def fc_module_ref(x, w1, b1, w2, b2, gamma, beta):
    h = x @ w1 + b1
    mean = h.mean(axis=0, keepdims=True)
    var = ((h - mean) ** 2).mean(axis=0, keepdims=True)
    h = (h - mean) * jax.lax.rsqrt(var + BN_EPS) * gamma + beta
    return jnp.maximum(h @ w2 + b2, 0.0) + x


if __name__ == "__main__":
    net_width = 256          # module default (W); lane-aligned
    hidden = net_width // 2  # 128 (H)

    key = jax.random.PRNGKey(0)
    kx, kw1, kb1, kw2, kb2, kx2 = jax.random.split(key, 6)

    # PyTorch-style init: U(-1/sqrt(fan_in), 1/sqrt(fan_in)); weights stored (in, out).
    lim1 = 1.0 / jnp.sqrt(jnp.float32(net_width))
    lim2 = 1.0 / jnp.sqrt(jnp.float32(hidden))
    w1 = jax.random.uniform(kw1, (net_width, hidden), jnp.float32, -lim1, lim1)
    b1 = jax.random.uniform(kb1, (1, hidden), jnp.float32, -lim1, lim1)
    w2 = jax.random.uniform(kw2, (hidden, net_width), jnp.float32, -lim2, lim2)
    b2 = jax.random.uniform(kb2, (1, net_width), jnp.float32, -lim2, lim2)
    gamma = jnp.ones((1, hidden), jnp.float32)   # BatchNorm1d default weight
    beta = jnp.zeros((1, hidden), jnp.float32)   # BatchNorm1d default bias

    # 1) Fused single-call path (default for small/medium batches).
    x_small = jax.random.normal(kx, (256, net_width), jnp.float32)
    fused_fn = jax.jit(functools.partial(fc_module, force_streaming=False))
    out_small = jax.block_until_ready(fused_fn(x_small, w1, b1, w2, b2, gamma, beta))
    ref_small = fc_module_ref(x_small, w1, b1, w2, b2, gamma, beta)
    assert out_small.shape == (256, net_width) and out_small.dtype == jnp.float32
    err_f = float(jnp.max(jnp.abs(out_small - ref_small)))
    # bf16 matmul operands (f32 accumulate) trade ~1e-3 relative rounding for halved
    # weight/activation DMA; compare against the f32 reference with matching tolerance.
    assert jnp.allclose(out_small, ref_small, atol=2e-2, rtol=2e-2), err_f

    # 2) Streaming path (forced here to exercise it; auto-selected for very large B).
    x_big = jax.random.normal(kx2, (4096, net_width), jnp.float32)
    stream_fn = jax.jit(functools.partial(fc_module, force_streaming=True))
    out_big = jax.block_until_ready(stream_fn(x_big, w1, b1, w2, b2, gamma, beta))
    ref_big = fc_module_ref(x_big, w1, b1, w2, b2, gamma, beta)
    assert out_big.shape == (4096, net_width) and out_big.dtype == jnp.float32
    err_s = float(jnp.max(jnp.abs(out_big - ref_big)))
    assert jnp.allclose(out_big, ref_big, atol=2e-2, rtol=2e-2), err_s

    print("KERNEL_OK")
</pallas_src>

<mosaic_0001>
module attributes {stable_mosaic.version = 11 : i64} {
  func.func @_fused_kernel(%arg0: memref<256x256xf32, #tpu.memory_space<vmem>>, %arg1: memref<256x128xbf16, #tpu.memory_space<vmem>>, %arg2: memref<1x128xf32, #tpu.memory_space<vmem>>, %arg3: memref<128x256xbf16, #tpu.memory_space<vmem>>, %arg4: memref<1x256xf32, #tpu.memory_space<vmem>>, %arg5: memref<1x128xf32, #tpu.memory_space<vmem>>, %arg6: memref<1x128xf32, #tpu.memory_space<vmem>>, %arg7: memref<256x256xf32, #tpu.memory_space<vmem>>) attributes {dimension_semantics = [], scalar_prefetch = 0 : i64, scratch_operands = 0 : i64, tpu.core_type = #tpu.core_type<tc>} {
    %c0 = arith.constant 0 : index
    %c0_0 = arith.constant 0 : index
    %0 = vector.load %arg0[%c0, %c0_0] : memref<256x256xf32, #tpu.memory_space<vmem>>, vector<256x256xf32>
    %1 = arith.truncf %0 : vector<256x256xf32> to vector<256x256xbf16>
    %c0_1 = arith.constant 0 : index
    %c0_2 = arith.constant 0 : index
    %2 = vector.load %arg1[%c0_1, %c0_2] : memref<256x128xbf16, #tpu.memory_space<vmem>>, vector<256x128xbf16>
    %cst = arith.constant dense<0.000000e+00> : vector<256x128xf32>
    %3 = tpu.matmul %1, %2, %cst {dimension_numbers = #tpu.dot_dimension_numbers<[1], [0], [0], [1], [0, 0, 1, 1], [], []>} : vector<256x256xbf16>, vector<256x128xbf16>, vector<256x128xf32> -> vector<256x128xf32>
    %c0_3 = arith.constant 0 : index
    %c0_4 = arith.constant 0 : index
    %4 = vector.load %arg2[%c0_3, %c0_4] : memref<1x128xf32, #tpu.memory_space<vmem>>, vector<1x128xf32>
    %5 = vector.broadcast %4 : vector<1x128xf32> to vector<256x128xf32>
    %6 = arith.addf %3, %5 : vector<256x128xf32>
    %cst_5 = arith.constant dense<0.000000e+00> : vector<128xf32>
    %7 = vector.multi_reduction <add>, %6, %cst_5 [0] : vector<256x128xf32> to vector<128xf32>
    %8 = vector.shape_cast %7 : vector<128xf32> to vector<1x128xf32>
    %cst_6 = arith.constant 3.906250e-03 : f32
    %9 = vector.broadcast %cst_6 : f32 to vector<1x128xf32>
    %10 = arith.mulf %8, %9 : vector<1x128xf32>
    %11 = vector.broadcast %10 : vector<1x128xf32> to vector<256x128xf32>
    %12 = arith.subf %6, %11 : vector<256x128xf32>
    %13 = arith.mulf %12, %12 : vector<256x128xf32>
    %cst_7 = arith.constant dense<0.000000e+00> : vector<128xf32>
    %14 = vector.multi_reduction <add>, %13, %cst_7 [0] : vector<256x128xf32> to vector<128xf32>
    %15 = vector.shape_cast %14 : vector<128xf32> to vector<1x128xf32>
    %cst_8 = arith.constant 3.906250e-03 : f32
    %16 = vector.broadcast %cst_8 : f32 to vector<1x128xf32>
    %17 = arith.mulf %15, %16 : vector<1x128xf32>
    %c0_9 = arith.constant 0 : index
    %c0_10 = arith.constant 0 : index
    %18 = vector.load %arg5[%c0_9, %c0_10] : memref<1x128xf32, #tpu.memory_space<vmem>>, vector<1x128xf32>
    %cst_11 = arith.constant 9.99999974E-6 : f32
    %19 = vector.broadcast %cst_11 : f32 to vector<1x128xf32>
    %20 = arith.addf %17, %19 : vector<1x128xf32>
    %21 = math.rsqrt %20 : vector<1x128xf32>
    %22 = arith.mulf %18, %21 : vector<1x128xf32>
    %23 = vector.broadcast %22 : vector<1x128xf32> to vector<256x128xf32>
    %24 = arith.mulf %12, %23 : vector<256x128xf32>
    %c0_12 = arith.constant 0 : index
    %c0_13 = arith.constant 0 : index
    %25 = vector.load %arg6[%c0_12, %c0_13] : memref<1x128xf32, #tpu.memory_space<vmem>>, vector<1x128xf32>
    %26 = vector.broadcast %25 : vector<1x128xf32> to vector<256x128xf32>
    %27 = arith.addf %24, %26 : vector<256x128xf32>
    %28 = arith.truncf %27 : vector<256x128xf32> to vector<256x128xbf16>
    %c0_14 = arith.constant 0 : index
    %c0_15 = arith.constant 0 : index
    %29 = vector.load %arg3[%c0_14, %c0_15] : memref<128x256xbf16, #tpu.memory_space<vmem>>, vector<128x256xbf16>
    %cst_16 = arith.constant dense<0.000000e+00> : vector<256x256xf32>
    %30 = tpu.matmul %28, %29, %cst_16 {dimension_numbers = #tpu.dot_dimension_numbers<[1], [0], [0], [1], [0, 0, 1, 1], [], []>} : vector<256x128xbf16>, vector<128x256xbf16>, vector<256x256xf32> -> vector<256x256xf32>
    %c0_17 = arith.constant 0 : index
    %c0_18 = arith.constant 0 : index
    %31 = vector.load %arg4[%c0_17, %c0_18] : memref<1x256xf32, #tpu.memory_space<vmem>>, vector<1x256xf32>
    %32 = vector.broadcast %31 : vector<1x256xf32> to vector<256x256xf32>
    %33 = arith.addf %30, %32 : vector<256x256xf32>
    %cst_19 = arith.constant 0.000000e+00 : f32
    %34 = vector.broadcast %cst_19 : f32 to vector<256x256xf32>
    %35 = arith.maximumf %33, %34 : vector<256x256xf32>
    %36 = arith.addf %35, %0 : vector<256x256xf32>
    %c0_20 = arith.constant 0 : index
    %c0_21 = arith.constant 0 : index
    %37 = vector.load %arg7[%c0_20, %c0_21] : memref<256x256xf32, #tpu.memory_space<vmem>>, vector<256x256xf32>
    tpu.vector_store %arg7[%c0_20, %c0_21], %36 {strides = array<i32>} : memref<256x256xf32, #tpu.memory_space<vmem>>, vector<256x256xf32>,
    return
  }
}

</mosaic_0001>

<bundles_post_ra>
// kernel: fc_module.1
= control target key start
LH: loop header
LB: loop body
LE: loop exit
PB: predicated region body
PF: predicated region fallthrough
CT: control target
= control target key end

     0   :  { %s2525_s0 = inlined_call_operand.vmem [shape: f32[256,256], index: 0, kind: input, shape index: {}]   ;;  %s2526_s1 = inlined_call_operand.vmem [shape: bf16[256,128], index: 1, kind: input, shape index: {}]   ;;  %s2527_s2 = inlined_call_operand.vmem [shape: f32[1,128], index: 2, kind: input, shape index: {}]   ;;  %s2528_s3 = inlined_call_operand.vmem [shape: bf16[128,256], index: 3, kind: input, shape index: {}]   ;;  %s2529_s4 = inlined_call_operand.vmem [shape: f32[1,256], index: 4, kind: input, shape index: {}]   ;;  %s2530_s5 = inlined_call_operand.vmem [shape: f32[1,128], index: 5, kind: input, shape index: {}]   ;;  %s2531_s6 = inlined_call_operand.vmem [shape: f32[1,128], index: 6, kind: input, shape index: {}]   ;;  %s2532_s7 = inlined_call_operand.hbm [shape: f32[256,256], index: 7, kind: output, shape index: {}]  }
   0x1   :  { %v1316_v0 = vld [vmem:[%s2526_s1 + $0x40] sm:$0xff]   ;;  %v1318_v2 = vld [vmem:[%s2526_s1 + $0x48] sm:$0xff]   ;;  %v1320_v4 = vld [vmem:[%s2526_s1 + $0x50] sm:$0xff]  }
   0x2   :  { %v1317_v1 = vld [vmem:[%s2526_s1] sm:$0xff]   ;;  %1200 = vmatprep.subr.bf16.mxu0 %v1316_v0  ;;  %v1319_v3 = vld [vmem:[%s2526_s1 + $0x8] sm:$0xff]   ;;  %v1321_v5 = vld [vmem:[%s2526_s1 + $0x10] sm:$0xff]  }
   0x3   :  { %1201 = vmatpush3.bf16.msra.mxu0 %v1317_v1  ;;  %v1322_v6 = vld [vmem:[%s2526_s1 + $0x58] sm:$0xff]   ;;  %v1324_v8 = vld [vmem:[%s2526_s1 + $0x60] sm:$0xff]   ;;  %v1326_v10 = vld [vmem:[%s2526_s1 + $0x68] sm:$0xff]  }
   0x4   :  { %1202 = vmatprep.subr.bf16.mxu0 %v1318_v2  ;;  %v1323_v7 = vld [vmem:[%s2526_s1 + $0x18] sm:$0xff]   ;;  %v1325_v9 = vld [vmem:[%s2526_s1 + $0x20] sm:$0xff]   ;;  %v29_v11 = vld [vmem:[%s2525_s0 + $0x8] sm:$0xff] }
   0x5   :  { %v31_v12 = vld [vmem:[%s2525_s0 + $0x18] sm:$0xff]  ;;  %v1327_v14 = vld [vmem:[%s2526_s1 + $0x28] sm:$0xff]   ;;  %v1328_v15 = vld [vmem:[%s2526_s1 + $0x70] sm:$0xff]  }
   0x6   :  { %v93_v13 = vpack.c.bf16 %v31_v12, %v29_v11  ;;  %v1329_v16 = vld [vmem:[%s2526_s1 + $0x30] sm:$0xff]   ;;  %v1330_v17 = vld [vmem:[%s2526_s1 + $0x78] sm:$0xff]   ;;  %v28_v19 = vld [vmem:[%s2525_s0] sm:$0xff] }
   0x7   :  { %1203 = vmatpush3.bf16.msra.mxu0 %v1319_v3  ;;  %v1331_v18 = vld [vmem:[%s2526_s1 + $0x38] sm:$0xff]   ;;  %v30_v20 = vld [vmem:[%s2525_s0 + $0x10] sm:$0xff]  ;;  %v33_v21 = vld [vmem:[%s2525_s0 + $0x28] sm:$0xff] }
   0x8   :  { %1204 = vmatprep.subr.bf16.mxu0 %v1320_v4  ;;  %291 = vmatprep.mubr.bf16.mxu0 %v93_v13  ;;  %v35_v22 = vld [vmem:[%s2525_s0 + $0x38] sm:$0xff]  ;;  %v92_v23 = vpack.c.bf16 %v30_v20, %v28_v19  ;;  %v32_v25 = vld [vmem:[%s2525_s0 + $0x20] sm:$0xff]  ;;  %v34_v26 = vld [vmem:[%s2525_s0 + $0x30] sm:$0xff] }
   0x9   :  { %v95_v24 = vpack.c.bf16 %v35_v22, %v33_v21  ;;  %v37_v27 = vld [vmem:[%s2525_s0 + $0x48] sm:$0xff]  ;;  %v39_v28 = vld [vmem:[%s2525_s0 + $0x58] sm:$0xff]  ;;  %v94_v29 = vpack.c.bf16 %v34_v26, %v32_v25 }
   0xa   :  { %v97_v30 = vpack.c.bf16 %v39_v28, %v37_v27 }
   0xb   :  { %1205 = vmatpush3.bf16.msra.mxu0 %v1321_v5 }
   0xc   :  { %1206 = vmatprep.subr.bf16.mxu0 %v1322_v6 }
   0xf   :  { %1207 = vmatpush3.bf16.msra.mxu0 %v1323_v7 }
  0x10   :  { %1208 = vmatprep.subr.bf16.mxu0 %v1324_v8 }
  0x13   :  { %1209 = vmatpush3.bf16.msra.mxu0 %v1325_v9 }
  0x14   :  { %1210 = vmatprep.subr.bf16.mxu0 %v1326_v10 }
  0x17   :  { %1211 = vmatpush3.bf16.msra.mxu0 %v1327_v14 }
  0x18   :  { %1212 = vmatprep.subr.bf16.mxu0 %v1328_v15 }
  0x1b   :  { %1213 = vmatpush3.bf16.msra.mxu0 %v1329_v16 }
  0x1c   :  { %1214 = vmatprep.subr.bf16.mxu0 %v1330_v17 }
  0x1f   :  { %1215 = vmatpush3.bf16.msra.mxu0 %v1331_v18 }
  0x22   :  { %292 = vmatmul.mubr.bf16.vlgmr.msra.gmra.mrb[0].mxu0 %v92_v23 }
  0x23   :  { %299 = vmatprep.mubr.bf16.mxu0 %v95_v24 }
  0x2a   :  { %300 = vmatmul.mubr.bf16.gmra.mrb[4].mxu0 %v94_v29 }
  0x2b   :  { %12 = vsyncpa [#allocation3], 0  ;;  %307 = vmatprep.mubr.bf16.mxu0 %v97_v30  ;;  %v36_v31 = vld [vmem:[%s2525_s0 + $0x40] sm:$0xff]  ;;  %v38_v32 = vld [vmem:[%s2525_s0 + $0x50] sm:$0xff]  ;;  %s1447_s10 = smov [#allocation2]  }
  0x2c   :  { %v41_v33 = vld [vmem:[%s2525_s0 + $0x68] sm:$0xff]  ;;  %v43_v34 = vld [vmem:[%s2525_s0 + $0x78] sm:$0xff]  ;;  %v96_v35 = vpack.c.bf16 %v38_v32, %v36_v31  ;;  %v40_v37 = vld [vmem:[%s2525_s0 + $0x60] sm:$0xff]  ;;  %s1155_s11 = sshll.u32 %s1447_s10, 4  ;;  %s1156_s11 = int_to_ptr.vmem [resolvable:$true] %s1155_s11 }
  0x2d   :  { %v99_v36 = vpack.c.bf16 %v43_v34, %v41_v33  ;;  %v42_v38 = vld [vmem:[%s2525_s0 + $0x70] sm:$0xff]  ;;  %v45_v39 = vld [vmem:[%s2525_s0 + $0x88] sm:$0xff]  ;;  %v47_v40 = vld [vmem:[%s2525_s0 + $0x98] sm:$0xff]  ;;  %s1422_s18 = scalar_lea.vmem %s1156_s11, 8192  ;;  %p1427_p1 = scmp.lt.s32.totalorder %s1156_s11, %s1156_s11 }
  0x2e   :  { %v98_v41 = vpack.c.bf16 %v42_v38, %v40_v37  ;;  %v101_v42 = vpack.c.bf16 %v47_v40, %v45_v39  ;;  %v44_v43 = vld [vmem:[%s2525_s0 + $0x80] sm:$0xff]  ;;  %v46_v44 = vld [vmem:[%s2525_s0 + $0x90] sm:$0xff]  ;;  %v49_v45 = vld [vmem:[%s2525_s0 + $0xa8] sm:$0xff]  ;;  %p1423_p0 = scmp.ne.s32.totalorder %s1156_s11, %s1422_s18  ;;  %p1428_p2 = scmp.lt.s32.totalorder %s1422_s18, %s1422_s18 }
  0x2f   :  { %v51_v46 = vld [vmem:[%s2525_s0 + $0xb8] sm:$0xff]  ;;  %v100_v47 = vpack.c.bf16 %v46_v44, %v44_v43  ;;  %v48_v49 = vld [vmem:[%s2525_s0 + $0xa0] sm:$0xff]  ;;  %v50_v50 = vld [vmem:[%s2525_s0 + $0xb0] sm:$0xff] }
  0x30   :  { %v103_v48 = vpack.c.bf16 %v51_v46, %v49_v45  ;;  %v53_v51 = vld [vmem:[%s2525_s0 + $0xc8] sm:$0xff]  ;;  %v55_v52 = vld [vmem:[%s2525_s0 + $0xd8] sm:$0xff]  ;;  %v102_v53 = vpack.c.bf16 %v50_v50, %v48_v49  ;;  %v52_v55 = vld [vmem:[%s2525_s0 + $0xc0] sm:$0xff]  ;;  %p1429_p3 = por %p1428_p2, %p1427_p1 }
  0x31   :  { %v105_v54 = vpack.c.bf16 %v55_v52, %v53_v51  ;;  %v54_v56 = vld [vmem:[%s2525_s0 + $0xd0] sm:$0xff]  ;;  %v57_v57 = vld [vmem:[%s2525_s0 + $0xe8] sm:$0xff]  ;;  %v59_v58 = vld [vmem:[%s2525_s0 + $0xf8] sm:$0xff] }
  0x32   :  { %308 = vmatmul.mubr.bf16.gmra.mrb[8].mxu0 %v96_v35  ;;  %v104_v59 = vpack.c.bf16 %v54_v56, %v52_v55  ;;  %v107_v60 = vpack.c.bf16 %v59_v58, %v57_v57  ;;  %v56_v61 = vld [vmem:[%s2525_s0 + $0xe0] sm:$0xff]  ;;  %v58_v62 = vld [vmem:[%s2525_s0 + $0xf0] sm:$0xff]  ;;  %v61_v63 = vld [vmem:[%s2525_s0 + $0x108] sm:$0xff]  ;;  %p1430_p4 = pnand %p1429_p3, %p1423_p0 }
  0x33   :  { %315 = vmatprep.mubr.bf16.mxu0 %v99_v36  ;;  %v63_v0 = vld [vmem:[%s2525_s0 + $0x118] sm:$0xff]  ;;  %v106_v1 = vpack.c.bf16 %v58_v62, %v56_v61  ;;  %v60_v3 = vld [vmem:[%s2525_s0 + $0x100] sm:$0xff]  ;;  %v62_v4 = vld [vmem:[%s2525_s0 + $0x110] sm:$0xff] }
  0x34   :  { %v109_v2 = vpack.c.bf16 %v63_v0, %v61_v63  ;;  %v65_v5 = vld [vmem:[%s2525_s0 + $0x128] sm:$0xff]  ;;  %v67_v6 = vld [vmem:[%s2525_s0 + $0x138] sm:$0xff]  ;;  %v108_v7 = vpack.c.bf16 %v62_v4, %v60_v3  ;;  %v64_v9 = vld [vmem:[%s2525_s0 + $0x120] sm:$0xff] }
  0x35   :  { %v111_v8 = vpack.c.bf16 %v67_v6, %v65_v5  ;;  %v66_v10 = vld [vmem:[%s2525_s0 + $0x130] sm:$0xff]  ;;  %v69_v11 = vld [vmem:[%s2525_s0 + $0x148] sm:$0xff]  ;;  %v71_v12 = vld [vmem:[%s2525_s0 + $0x158] sm:$0xff] }
  0x36   :  { %v110_v13 = vpack.c.bf16 %v66_v10, %v64_v9  ;;  %v113_v14 = vpack.c.bf16 %v71_v12, %v69_v11  ;;  %v68_v15 = vld [vmem:[%s2525_s0 + $0x140] sm:$0xff]  ;;  %v70_v16 = vld [vmem:[%s2525_s0 + $0x150] sm:$0xff]  ;;  %v73_v17 = vld [vmem:[%s2525_s0 + $0x168] sm:$0xff] }
  0x37   :  { %v75_v18 = vld [vmem:[%s2525_s0 + $0x178] sm:$0xff]  ;;  %v112_v19 = vpack.c.bf16 %v70_v16, %v68_v15  ;;  %v72_v21 = vld [vmem:[%s2525_s0 + $0x160] sm:$0xff]  ;;  %v74_v22 = vld [vmem:[%s2525_s0 + $0x170] sm:$0xff] }
  0x38   :  { %v115_v20 = vpack.c.bf16 %v75_v18, %v73_v17  ;;  %v77_v23 = vld [vmem:[%s2525_s0 + $0x188] sm:$0xff]  ;;  %v79_v24 = vld [vmem:[%s2525_s0 + $0x198] sm:$0xff]  ;;  %v114_v25 = vpack.c.bf16 %v74_v22, %v72_v21  ;;  %v76_v27 = vld [vmem:[%s2525_s0 + $0x180] sm:$0xff] }
  0x39   :  { %v117_v26 = vpack.c.bf16 %v79_v24, %v77_v23  ;;  %v78_v28 = vld [vmem:[%s2525_s0 + $0x190] sm:$0xff]  ;;  %v81_v29 = vld [vmem:[%s2525_s0 + $0x1a8] sm:$0xff]  ;;  %v83_v30 = vld [vmem:[%s2525_s0 + $0x1b8] sm:$0xff] }
  0x3a   :  { %316 = vmatmul.mubr.bf16.gmra.mrb[12].mxu0 %v98_v41  ;;  %v116_v31 = vpack.c.bf16 %v78_v28, %v76_v27  ;;  %v119_v32 = vpack.c.bf16 %v83_v30, %v81_v29  ;;  %v80_v33 = vld [vmem:[%s2525_s0 + $0x1a0] sm:$0xff]  ;;  %v82_v34 = vld [vmem:[%s2525_s0 + $0x1b0] sm:$0xff]  ;;  %v85_v35 = vld [vmem:[%s2525_s0 + $0x1c8] sm:$0xff] }
  0x3b   :  { %323 = vmatprep.mubr.bf16.mxu0 %v101_v42  ;;  %v87_v36 = vld [vmem:[%s2525_s0 + $0x1d8] sm:$0xff]  ;;  %v118_v37 = vpack.c.bf16 %v82_v34, %v80_v33  ;;  %v84_v39 = vld [vmem:[%s2525_s0 + $0x1c0] sm:$0xff]  ;;  %v86_v40 = vld [vmem:[%s2525_s0 + $0x1d0] sm:$0xff] }
  0x3c   :  { %v121_v38 = vpack.c.bf16 %v87_v36, %v85_v35  ;;  %v89_v41 = vld [vmem:[%s2525_s0 + $0x1e8] sm:$0xff]  ;;  %v91_v42 = vld [vmem:[%s2525_s0 + $0x1f8] sm:$0xff]  ;;  %v120_v43 = vpack.c.bf16 %v86_v40, %v84_v39  ;;  %v88_v45 = vld [vmem:[%s2525_s0 + $0x1e0] sm:$0xff] }
  0x3d   :  { %v123_v44 = vpack.c.bf16 %v91_v42, %v89_v41  ;;  %v90_v46 = vld [vmem:[%s2525_s0 + $0x1f0] sm:$0xff]  ;;  %v1733_v3 = vld [vmem:[%s2527_s2] ss:$0 sm:$0xff] }
  0x42   :  { %324 = vmatmul.mubr.bf16.gmra.mrb[16].mxu0 %v100_v47  ;;  %v122_v47 = vpack.c.bf16 %v90_v46, %v88_v45 }
  0x43   :  { %331 = vmatprep.mubr.bf16.mxu0 %v103_v48 }
  0x4a   :  { %332 = vmatmul.mubr.bf16.gmra.mrb[20].mxu0 %v102_v53 }
  0x4b   :  { %339 = vmatprep.mubr.bf16.mxu0 %v105_v54 }
  0x52   :  { %340 = vmatmul.mubr.bf16.gmra.mrb[24].mxu0 %v104_v59 }
  0x53   :  { %347 = vmatprep.mubr.bf16.mxu0 %v107_v60 }
  0x5a   :  { %348 = vmatmul.mubr.bf16.gmra.mrb[28].mxu0 %v106_v1 }
  0x5b   :  { %355 = vmatprep.mubr.bf16.mxu0 %v109_v2 }
  0x62   :  { %356 = vmatmul.mubr.bf16.gmra.mrb[32].mxu0 %v108_v7 }
  0x63   :  { %363 = vmatprep.mubr.bf16.mxu0 %v111_v8 }
  0x6a   :  { %364 = vmatmul.mubr.bf16.gmra.mrb[36].mxu0 %v110_v13 }
  0x6b   :  { %371 = vmatprep.mubr.bf16.mxu0 %v113_v14 }
  0x72   :  { %372 = vmatmul.mubr.bf16.gmra.mrb[40].mxu0 %v112_v19 }
  0x73   :  { %379 = vmatprep.mubr.bf16.mxu0 %v115_v20 }
  0x7a   :  { %380 = vmatmul.mubr.bf16.gmra.mrb[44].mxu0 %v114_v25 }
  0x7b   :  { %387 = vmatprep.mubr.bf16.mxu0 %v117_v26 }
  0x82   :  { %388 = vmatmul.mubr.bf16.gmra.mrb[48].mxu0 %v116_v31 }
  0x83   :  { %395 = vmatprep.mubr.bf16.mxu0 %v119_v32 }
  0x8a   :  { %396 = vmatmul.mubr.bf16.gmra.mrb[52].mxu0 %v118_v37 }
  0x8b   :  { %403 = vmatprep.mubr.bf16.mxu0 %v121_v38 }
  0x92   :  { %404 = vmatmul.mubr.bf16.gmra.mrb[56].mxu0 %v120_v43 }
  0x93   :  { %411 = vmatprep.mubr.bf16.mxu0 %v123_v44 }
  0x9a   :  { %412 = vmatmul.mubr.bf16.gmra.mrb[60].mxu0 %v122_v47 }
  0xf5   :  { %v1216_v48 = vpop.f32.mrb[0].mxu0 }
  0xf6   :  { %v1217_v49 = vpop.f32.mrb[1].mxu0 }
  0xf7   :  { %v1218_v50 = vadd.f32 %v1217_v49, %v1216_v48  ;;  %v1219_v51 = vpop.f32.mrb[2].mxu0 }
  0xf8   :  { %v1220_v52 = vpop.f32.mrb[3].mxu0 }
  0xf9   :  { %v1221_v53 = vadd.f32 %v1220_v52, %v1219_v51  ;;  %v1739_v9 = vadd.f32 %v1218_v50, %v1733_v3 }
  0xfb   :  { %v1736_v5 = vadd.f32 %v1221_v53, %v1733_v3 }
  0xfd   :  { %v1222_v54 = vpop.f32.mrb[4].mxu0  ;;  %v420_v12 = vadd.f32 %v1736_v5, %v1739_v9 }
  0xfe   :  { %v1223_v55 = vpop.f32.mrb[5].mxu0 }
  0xff   :  { %v1224_v56 = vadd.f32 %v1223_v55, %v1222_v54  ;;  %v1225_v57 = vpop.f32.mrb[6].mxu0 }
 0x100   :  { %v1226_v58 = vpop.f32.mrb[7].mxu0 }
 0x101   :  { %v1227_v59 = vadd.f32 %v1226_v58, %v1225_v57  ;;  %v1742_v10 = vadd.f32 %v1224_v56, %v1733_v3 }
 0x103   :  { %v421_v13 = vadd.f32 %v420_v12, %v1742_v10  ;;  %v1748_v14 = vadd.f32 %v1227_v59, %v1733_v3 }
 0x105   :  { %v1228_v60 = vpop.f32.mrb[8].mxu0  ;;  %v422_v21 = vadd.f32 %v421_v13, %v1748_v14 }
 0x106   :  { %v1229_v61 = vpop.f32.mrb[9].mxu0 }
 0x107   :  { %v1230_v62 = vadd.f32 %v1229_v61, %v1228_v60  ;;  %v1231_v63 = vpop.f32.mrb[10].mxu0 }
 0x108   :  { %v1232_v0 = vpop.f32.mrb[11].mxu0 }
 0x109   :  { %v1233_v1 = vadd.f32 %v1232_v0, %v1231_v63  ;;  %v1751_v17 = vadd.f32 %v1230_v62, %v1733_v3 }
 0x10b   :  { %v423_v23 = vadd.f32 %v422_v21, %v1751_v17  ;;  %v1756_v24 = vadd.f32 %v1233_v1, %v1733_v3 }
 0x10d   :  { %v1234_v2 = vpop.f32.mrb[12].mxu0  ;;  %v424_v28 = vadd.f32 %v423_v23, %v1756_v24 }
 0x10e   :  { %v1235_v4 = vpop.f32.mrb[13].mxu0 }
 0x10f   :  { %v1236_v6 = vadd.f32 %v1235_v4, %v1234_v2  ;;  %v1237_v7 = vpop.f32.mrb[14].mxu0 }
 0x110   :  { %v1238_v8 = vpop.f32.mrb[15].mxu0 }
 0x111   :  { %v1239_v11 = vadd.f32 %v1238_v8, %v1237_v7  ;;  %v1759_v25 = vadd.f32 %v1236_v6, %v1733_v3 }
 0x113   :  { %v425_v32 = vadd.f32 %v424_v28, %v1759_v25  ;;  %v1764_v33 = vadd.f32 %v1239_v11, %v1733_v3 }
 0x115   :  { %v1240_v15 = vpop.f32.mrb[16].mxu0  ;;  %v426_v36 = vadd.f32 %v425_v32, %v1764_v33 }
 0x116   :  { %v1241_v16 = vpop.f32.mrb[17].mxu0 }
 0x117   :  { %v1242_v18 = vadd.f32 %v1241_v16, %v1240_v15  ;;  %v1243_v19 = vpop.f32.mrb[18].mxu0 }
 0x118   :  { %v1244_v20 = vpop.f32.mrb[19].mxu0 }
 0x119   :  { %v1245_v22 = vadd.f32 %v1244_v20, %v1243_v19  ;;  %v1767_v35 = vadd.f32 %v1242_v18, %v1733_v3 }
 0x11b   :  { %v427_v39 = vadd.f32 %v426_v36, %v1767_v35  ;;  %v1772_v40 = vadd.f32 %v1245_v22, %v1733_v3 }
 0x11d   :  { %v1246_v26 = vpop.f32.mrb[20].mxu0  ;;  %v428_v46 = vadd.f32 %v427_v39, %v1772_v40 }
 0x11e   :  { %v1247_v27 = vpop.f32.mrb[21].mxu0 }
 0x11f   :  { %v1248_v29 = vadd.f32 %v1247_v27, %v1246_v26  ;;  %v1249_v30 = vpop.f32.mrb[22].mxu0 }
 0x120   :  { %v1250_v31 = vpop.f32.mrb[23].mxu0 }
 0x121   :  { %v1251_v34 = vadd.f32 %v1250_v31, %v1249_v30  ;;  %v1775_v44 = vadd.f32 %v1248_v29, %v1733_v3 }
 0x123   :  { %v429_v47 = vadd.f32 %v428_v46, %v1775_v44  ;;  %v1780_v48 = vadd.f32 %v1251_v34, %v1733_v3 }
 0x125   :  { %v1252_v37 = vpop.f32.mrb[24].mxu0  ;;  %v430_v55 = vadd.f32 %v429_v47, %v1780_v48 }
 0x126   :  { %v1253_v38 = vpop.f32.mrb[25].mxu0 }
 0x127   :  { %v1254_v41 = vadd.f32 %v1253_v38, %v1252_v37  ;;  %v1255_v42 = vpop.f32.mrb[26].mxu0 }
 0x128   :  { %v1256_v43 = vpop.f32.mrb[27].mxu0 }
 0x129   :  { %v1257_v45 = vadd.f32 %v1256_v43, %v1255_v42  ;;  %v1783_v51 = vadd.f32 %v1254_v41, %v1733_v3 }
 0x12b   :  { %v431_v57 = vadd.f32 %v430_v55, %v1783_v51  ;;  %v1788_v58 = vadd.f32 %v1257_v45, %v1733_v3 }
 0x12d   :  { %v1258_v49 = vpop.f32.mrb[28].mxu0  ;;  %v432_v62 = vadd.f32 %v431_v57, %v1788_v58 }
 0x12e   :  { %v1259_v50 = vpop.f32.mrb[29].mxu0 }
 0x12f   :  { %v1260_v52 = vadd.f32 %v1259_v50, %v1258_v49  ;;  %v1261_v53 = vpop.f32.mrb[30].mxu0 }
 0x130   :  { %v1262_v54 = vpop.f32.mrb[31].mxu0 }
 0x131   :  { %v1263_v56 = vadd.f32 %v1262_v54, %v1261_v53  ;;  %v1791_v59 = vadd.f32 %v1260_v52, %v1733_v3 }
 0x133   :  { %v433_v2 = vadd.f32 %v432_v62, %v1791_v59  ;;  %v1796_v4 = vadd.f32 %v1263_v56, %v1733_v3 }
 0x135   :  { %v1264_v60 = vpop.f32.mrb[32].mxu0  ;;  %v434_v8 = vadd.f32 %v433_v2, %v1796_v4 }
 0x136   :  { %v1265_v61 = vpop.f32.mrb[33].mxu0 }
 0x137   :  { %v1266_v63 = vadd.f32 %v1265_v61, %v1264_v60  ;;  %v1267_v0 = vpop.f32.mrb[34].mxu0 }
 0x138   :  { %v1268_v1 = vpop.f32.mrb[35].mxu0 }
 0x139   :  { %v1269_v6 = vadd.f32 %v1268_v1, %v1267_v0  ;;  %v1799_v7 = vadd.f32 %v1266_v63, %v1733_v3 }
 0x13b   :  { %v435_v13 = vadd.f32 %v434_v8, %v1799_v7  ;;  %v1804_v15 = vadd.f32 %v1269_v6, %v1733_v3  ;;  %v1332_v6 = vld [vmem:[%s2528_s3 + $0x4] ss:$8 sps:$4 sm:$0xff]  }
 0x13c   :  { %765 = vmatprep.subr.bf16.mxu1 %v1332_v6  ;;  %v1349_v6 = vld [vmem:[%s2528_s3 + $0x50] ss:$8 sps:$4 sm:$0xff]  }
 0x13d   :  { %v1270_v11 = vpop.f32.mrb[36].mxu0  ;;  %v436_v22 = vadd.f32 %v435_v13, %v1804_v15 }
 0x13e   :  { %v1271_v12 = vpop.f32.mrb[37].mxu0 }
 0x13f   :  { %v1272_v16 = vadd.f32 %v1271_v12, %v1270_v11  ;;  %v1273_v18 = vpop.f32.mrb[38].mxu0  ;;  %v1334_v11 = vld [vmem:[%s2528_s3] ss:$8 sps:$4 sm:$0xff]  }
 0x140   :  { %v1274_v19 = vpop.f32.mrb[39].mxu0  ;;  %766 = vmatpush1.bf16.msra.mxu1 %v1334_v11 }
 0x141   :  { %v1807_v20 = vadd.f32 %v1272_v16, %v1733_v3  ;;  %v1275_v21 = vadd.f32 %v1274_v19, %v1273_v18 }
 0x143   :  { %v437_v23 = vadd.f32 %v436_v22, %v1807_v20  ;;  %v1812_v26 = vadd.f32 %v1275_v21, %v1733_v3  ;;  %v1335_v21 = vld [vmem:[%s2528_s3 + $0x14] ss:$8 sps:$4 sm:$0xff]   ;;  %v1337_v22 = vld [vmem:[%s2528_s3 + $0x10] ss:$8 sps:$4 sm:$0xff]  }
 0x144   :  { %767 = vmatprep.subr.bf16.mxu1 %v1335_v21 }
 0x145   :  { %v1276_v27 = vpop.f32.mrb[40].mxu0  ;;  %v438_v32 = vadd.f32 %v437_v23, %v1812_v26  ;;  %768 = vmatpush1.bf16.msra.mxu1 %v1337_v22  ;;  %v1353_v22 = vld [vmem:[%s2528_s3 + $0x74] ss:$8 sps:$4 sm:$0xff]  }
 0x146   :  { %v1277_v28 = vpop.f32.mrb[41].mxu0 }
 0x147   :  { %v1278_v29 = vadd.f32 %v1277_v28, %v1276_v27  ;;  %v1279_v30 = vpop.f32.mrb[42].mxu0 }
 0x148   :  { %v1280_v31 = vpop.f32.mrb[43].mxu0 }
 0x149   :  { %v1816_v34 = vadd.f32 %v1278_v29, %v1733_v3  ;;  %v1281_v36 = vadd.f32 %v1280_v31, %v1279_v30  ;;  %v1338_v30 = vld [vmem:[%s2528_s3 + $0x24] ss:$8 sps:$4 sm:$0xff]  }
 0x14a   :  { %769 = vmatprep.subr.bf16.mxu1 %v1338_v30 }
 0x14b   :  { %v439_v37 = vadd.f32 %v438_v32, %v1816_v34  ;;  %v1820_v38 = vadd.f32 %v1281_v36, %v1733_v3  ;;  %v1340_v32 = vld [vmem:[%s2528_s3 + $0x20] ss:$8 sps:$4 sm:$0xff]  }
 0x14c   :  { %770 = vmatpush1.bf16.msra.mxu1 %v1340_v32 }
 0x14d   :  { %v440_v39 = vadd.f32 %v439_v37, %v1820_v38  ;;  %v1282_v41 = vpop.f32.mrb[44].mxu0 }
 0x14e   :  { %v1283_v42 = vpop.f32.mrb[45].mxu0 }
 0x14f   :  { %v1284_v43 = vadd.f32 %v1283_v42, %v1282_v41  ;;  %v1285_v45 = vpop.f32.mrb[46].mxu0 }
 0x150   :  { %v1286_v46 = vpop.f32.mrb[47].mxu0 }
 0x151   :  { %v1824_v47 = vadd.f32 %v1284_v43, %v1733_v3  ;;  %v1287_v49 = vadd.f32 %v1286_v46, %v1285_v45  ;;  %v1341_v43 = vld [vmem:[%s2528_s3 + $0x34] ss:$8 sps:$4 sm:$0xff]   ;;  %v1343_v45 = vld [vmem:[%s2528_s3 + $0x30] ss:$8 sps:$4 sm:$0xff]  }
 0x152   :  { %771 = vmatprep.subr.bf16.mxu1 %v1341_v43 }
 0x153   :  { %v441_v50 = vadd.f32 %v440_v39, %v1824_v47  ;;  %v1828_v52 = vadd.f32 %v1287_v49, %v1733_v3  ;;  %772 = vmatpush1.bf16.msra.mxu1 %v1343_v45 }
 0x155   :  { %v442_v53 = vadd.f32 %v441_v50, %v1828_v52  ;;  %v1288_v54 = vpop.f32.mrb[48].mxu0 }
 0x156   :  { %v1289_v55 = vpop.f32.mrb[49].mxu0 }
 0x157   :  { %v1290_v56 = vadd.f32 %v1289_v55, %v1288_v54  ;;  %v1291_v57 = vpop.f32.mrb[50].mxu0  ;;  %v1344_v54 = vld [vmem:[%s2528_s3 + $0x44] ss:$8 sps:$4 sm:$0xff]  }
 0x158   :  { %v1292_v60 = vpop.f32.mrb[51].mxu0  ;;  %773 = vmatprep.subr.bf16.mxu1 %v1344_v54 }
 0x159   :  { %v1832_v61 = vadd.f32 %v1290_v56, %v1733_v3  ;;  %v1293_v62 = vadd.f32 %v1292_v60, %v1291_v57  ;;  %v1346_v56 = vld [vmem:[%s2528_s3 + $0x40] ss:$8 sps:$4 sm:$0xff]  }
 0x15a   :  { %774 = vmatpush1.bf16.msra.mxu1 %v1346_v56 }
 0x15b   :  { %v443_v63 = vadd.f32 %v442_v53, %v1832_v61  ;;  %v1836_v0 = vadd.f32 %v1293_v62, %v1733_v3 }
 0x15d   :  { %v444_v1 = vadd.f32 %v443_v63, %v1836_v0  ;;  %v1294_v2 = vpop.f32.mrb[52].mxu0 }
 0x15e   :  { %v1295_v8 = vpop.f32.mrb[53].mxu0 }
 0x15f   :  { %v1296_v12 = vadd.f32 %v1295_v8, %v1294_v2  ;;  %v1297_v13 = vpop.f32.mrb[54].mxu0  ;;  %v1347_v2 = vld [vmem:[%s2528_s3 + $0x54] ss:$8 sps:$4 sm:$0xff]  }
 0x160   :  { %v1298_v16 = vpop.f32.mrb[55].mxu0  ;;  %775 = vmatprep.subr.bf16.mxu1 %v1347_v2 }
 0x161   :  { %v1846_v18 = vadd.f32 %v1296_v12, %v1733_v3  ;;  %v1299_v19 = vadd.f32 %v1298_v16, %v1297_v13  ;;  %776 = vmatpush1.bf16.msra.mxu1 %v1349_v6  ;;  %v1350_v13 = vld [vmem:[%s2528_s3 + $0x64] ss:$8 sps:$4 sm:$0xff]   ;;  %v1352_v16 = vld [vmem:[%s2528_s3 + $0x60] ss:$8 sps:$4 sm:$0xff]  }
 0x162   :  { %777 = vmatprep.subr.bf16.mxu1 %v1350_v13 }
 0x163   :  { %v445_v23 = vadd.f32 %v444_v1, %v1846_v18  ;;  %v1856_v27 = vadd.f32 %v1299_v19, %v1733_v3 }
 0x165   :  { %v446_v28 = vadd.f32 %v445_v23, %v1856_v27  ;;  %v1300_v29 = vpop.f32.mrb[56].mxu0  ;;  %778 = vmatpush1.bf16.msra.mxu1 %v1352_v16  ;;  %v1446_v23 = vmov 0  }
 0x166   :  { %v1301_v31 = vpop.f32.mrb[57].mxu0  ;;  %797 = vmatprep.mubr.bf16.mxu1 %v1446_v23  ;;  %779 = vmatprep.subr.bf16.mxu1 %v1353_v22 }
 0x167   :  { %v1302_v36 = vadd.f32 %v1301_v31, %v1300_v29  ;;  %v1303_v37 = vpop.f32.mrb[58].mxu0 }
 0x168   :  { %v1304_v39 = vpop.f32.mrb[59].mxu0 }
 0x169   :  { %v406_v41 = vadd.f32 %v1302_v36, %v1733_v3  ;;  %v1305_v42 = vadd.f32 %v1304_v39, %v1303_v37 }
 0x16b   :  { %v447_v46 = vadd.f32 %v446_v28, %v406_v41  ;;  %v409_v49 = vadd.f32 %v1305_v42, %v1733_v3 }
 0x16d   :  { %v448_v50 = vadd.f32 %v447_v46, %v409_v49  ;;  %v1306_v53 = vpop.f32.mrb[60].mxu0 }
 0x16e   :  { %v1307_v55 = vpop.f32.mrb[61].mxu0 }
 0x16f   :  { %v1308_v57 = vadd.f32 %v1307_v55, %v1306_v53  ;;  %v1309_v60 = vpop.f32.mrb[62].mxu0 }
 0x170   :  { %v1310_v62 = vpop.f32.mrb[63].mxu0 }
 0x171   :  { %v414_v63 = vadd.f32 %v1308_v57, %v1733_v3  ;;  %v1311_v1 = vadd.f32 %v1310_v62, %v1309_v60 }
 0x173   :  { %v449_v8 = vadd.f32 %v448_v50, %v414_v63  ;;  %v417_v11 = vadd.f32 %v1311_v1, %v1733_v3  ;;  %v1355_v3 = vld [vmem:[%s2528_s3 + $0x70] ss:$8 sps:$4 sm:$0xff]  }
 0x174   :  { %780 = vmatpush1.bf16.msra.mxu1 %v1355_v3 }
 0x175   :  { %v450_v12 = vadd.f32 %v449_v8, %v417_v11 }
 0x177   :  { %v451_v19 = vrot.slane %v450_v12, 4 }
 0x179   :  { %v452_v21 = vadd.f32 %v451_v19, %v450_v12 }
 0x17b   :  { %v453_v28 = vrot.slane %v452_v21, 2 }
 0x17d   :  { %v454_v29 = vadd.f32 %v453_v28, %v452_v21 }
 0x17f   :  { %v455_v30 = vrot.slane %v454_v29, 1 }
 0x181   :  { %v456_v31 = vadd.f32 %v455_v30, %v454_v29 }
 0x183   :  { %v1900_v32 = vmul.f32 0.00390625, %v456_v31 }
 0x185   :  { %v1904_v36 = vsub.f32 %v1816_v34, %v1900_v32  ;;  %v1908_v37 = vsub.f32 %v1820_v38, %v1900_v32  ;;  %v1912_v39 = vsub.f32 %v1824_v47, %v1900_v32  ;;  %v1916_v42 = vsub.f32 %v1828_v52, %v1900_v32 }
 0x186   :  { %v1920_v43 = vsub.f32 %v1832_v61, %v1900_v32  ;;  %v1924_v34 = vsub.f32 %v1836_v0, %v1900_v32  ;;  %v1928_v38 = vsub.f32 %v1846_v18, %v1900_v32  ;;  %v1932_v47 = vsub.f32 %v1856_v27, %v1900_v32 }
 0x187   :  { %v1935_v45 = vsub.f32 %v406_v41, %v1900_v32  ;;  %v1938_v52 = vsub.f32 %v409_v49, %v1900_v32  ;;  %v1941_v61 = vsub.f32 %v414_v63, %v1900_v32  ;;  %v1944_v0 = vsub.f32 %v417_v11, %v1900_v32 }
 0x188   :  { %v1948_v18 = vsub.f32 %v1739_v9, %v1900_v32  ;;  %v1952_v27 = vsub.f32 %v1736_v5, %v1900_v32  ;;  %v1956_v41 = vsub.f32 %v1742_v10, %v1900_v32  ;;  %v1964_v50 = vsub.f32 %v1748_v14, %v1900_v32 }
 0x189   :  { %v1968_v9 = vsub.f32 %v1751_v17, %v1900_v32  ;;  %v1974_v10 = vsub.f32 %v1756_v24, %v1900_v32  ;;  %v1980_v14 = vsub.f32 %v1759_v25, %v1900_v32  ;;  %v1986_v57 = vsub.f32 %v1764_v33, %v1900_v32 }
 0x18a   :  { %v490_v46 = vmul.f32 %v1948_v18, %v1948_v18  ;;  %v491_v49 = vmul.f32 %v1952_v27, %v1952_v27  ;;  %v492_v5 = vmul.f32 %v1956_v41, %v1956_v41  ;;  %v493_v54 = vmul.f32 %v1964_v50, %v1964_v50 }
 0x18b   :  { %v494_v17 = vmul.f32 %v1968_v9, %v1968_v9  ;;  %v495_v24 = vmul.f32 %v1974_v10, %v1974_v10  ;;  %v1992_v62 = vsub.f32 %v1767_v35, %v1900_v32  ;;  %v496_v25 = vmul.f32 %v1980_v14, %v1980_v14 }
 0x18c   :  { %v522_v53 = vadd.f32 %v491_v49, %v490_v46  ;;  %v1998_v1 = vsub.f32 %v1772_v40, %v1900_v32  ;;  %v497_v33 = vmul.f32 %v1986_v57, %v1986_v57  ;;  %v2004_v6 = vsub.f32 %v1775_v44, %v1900_v32 }
 0x18d   :  { %v498_v35 = vmul.f32 %v1992_v62, %v1992_v62  ;;  %v2010_v11 = vsub.f32 %v1780_v48, %v1900_v32  ;;  %v2016_v13 = vsub.f32 %v1783_v51, %v1900_v32  ;;  %v2022_v19 = vsub.f32 %v1788_v58, %v1900_v32 }
 0x18e   :  { %v523_v55 = vadd.f32 %v522_v53, %v492_v5  ;;  %v499_v40 = vmul.f32 %v1998_v1, %v1998_v1  ;;  %v500_v44 = vmul.f32 %v2004_v6, %v2004_v6  ;;  %v2028_v22 = vsub.f32 %v1791_v59, %v1900_v32 }
 0x18f   :  { %v501_v48 = vmul.f32 %v2010_v11, %v2010_v11  ;;  %v502_v51 = vmul.f32 %v2016_v13, %v2016_v13  ;;  %v2034_v28 = vsub.f32 %v1796_v4, %v1900_v32  ;;  %v503_v58 = vmul.f32 %v2022_v19, %v2022_v19 }
 0x190   :  { %v524_v56 = vadd.f32 %v523_v55, %v493_v54  ;;  %v2040_v30 = vsub.f32 %v1799_v7, %v1900_v32  ;;  %v504_v59 = vmul.f32 %v2028_v22, %v2028_v22  ;;  %v2046_v46 = vsub.f32 %v1804_v15, %v1900_v32 }
 0x191   :  { %v505_v4 = vmul.f32 %v2034_v28, %v2034_v28  ;;  %v2052_v5 = vsub.f32 %v1807_v20, %v1900_v32  ;;  %v477_v54 = vsub.f32 %v1812_v26, %v1900_v32  ;;  %v510_v20 = vmul.f32 %v1904_v36, %v1904_v36 }
 0x192   :  { %v525_v60 = vadd.f32 %v524_v56, %v494_v17  ;;  %v506_v7 = vmul.f32 %v2040_v30, %v2040_v30  ;;  %v507_v55 = vmul.f32 %v2046_v46, %v2046_v46  ;;  %v512_v26 = vmul.f32 %v1912_v39, %v1912_v39 }
 0x193   :  { %v508_v17 = vmul.f32 %v2052_v5, %v2052_v5 }
 0x194   :  { %v526_v63 = vadd.f32 %v525_v60, %v495_v24  ;;  %v509_v24 = vmul.f32 %v477_v54, %v477_v54 }
 0x196   :  { %v527_v2 = vadd.f32 %v526_v63, %v496_v25  ;;  %v511_v63 = vmul.f32 %v1908_v37, %v1908_v37 }
 0x198   :  { %v528_v8 = vadd.f32 %v527_v2, %v497_v33  ;;  %v513_v2 = vmul.f32 %v1916_v42, %v1916_v42 }
 0x19a   :  { %v529_v12 = vadd.f32 %v528_v8, %v498_v35  ;;  %v514_v8 = vmul.f32 %v1920_v43, %v1920_v43 }
 0x19c   :  { %v530_v16 = vadd.f32 %v529_v12, %v499_v40  ;;  %v515_v12 = vmul.f32 %v1924_v34, %v1924_v34 }
 0x19e   :  { %v531_v21 = vadd.f32 %v530_v16, %v500_v44  ;;  %v516_v16 = vmul.f32 %v1928_v38, %v1928_v38 }
 0x1a0   :  { %v532_v3 = vadd.f32 %v531_v21, %v501_v48  ;;  %v517_v21 = vmul.f32 %v1932_v47, %v1932_v47 }
 0x1a2   :  { %v533_v29 = vadd.f32 %v532_v3, %v502_v51  ;;  %v518_v3 = vmul.f32 %v1935_v45, %v1935_v45 }
 0x1a4   :  { %v534_v31 = vadd.f32 %v533_v29, %v503_v58  ;;  %v519_v29 = vmul.f32 %v1938_v52, %v1938_v52 }
 0x1a6   :  { %v535_v49 = vadd.f32 %v534_v31, %v504_v59  ;;  %v520_v31 = vmul.f32 %v1941_v61, %v1941_v61 }
 0x1a8   :  { %v536_v53 = vadd.f32 %v535_v49, %v505_v4  ;;  %v521_v49 = vmul.f32 %v1944_v0, %v1944_v0 }
 0x1aa   :  { %v537_v15 = vadd.f32 %v536_v53, %v506_v7 }
 0x1ac   :  { %v538_v56 = vadd.f32 %v537_v15, %v507_v55 }
 0x1ae   :  { %v539_v60 = vadd.f32 %v538_v56, %v508_v17 }
 0x1b0   :  { %v540_v25 = vadd.f32 %v539_v60, %v509_v24 }
 0x1b2   :  { %v541_v33 = vadd.f32 %v540_v25, %v510_v20 }
 0x1b4   :  { %v542_v32 = vadd.f32 %v541_v33, %v511_v63  ;;  %v565_v63 = vlaneseq }
 0x1b6   :  { %v543_v35 = vadd.f32 %v542_v32, %v512_v26  ;;  %v2086_v33 = vshrl.u32 %v565_v63, 7  ;;  %v560_v26 = vld [vmem:[%s2530_s5] sm:$0x1] }
 0x1b8   :  { %v544_v40 = vadd.f32 %v543_v35, %v513_v2  ;;  %v567_v35 = vsub.s32 0, %v2086_v33 }
 0x1ba   :  { %v545_v44 = vadd.f32 %v544_v40, %v514_v8 }
 0x1bc   :  { %v546_v48 = vadd.f32 %v545_v44, %v515_v12  ;;  %v2103_v44 = vld [vmem:[%s2531_s6] ss:$0 sm:$0xff] }
 0x1be   :  { %v547_v51 = vadd.f32 %v546_v48, %v516_v16 }
 0x1c0   :  { %v548_v58 = vadd.f32 %v547_v51, %v517_v21 }
 0x1c2   :  { %v549_v59 = vadd.f32 %v548_v58, %v518_v3 }
 0x1c4   :  { %v550_v4 = vadd.f32 %v549_v59, %v519_v29 }
 0x1c6   :  { %v551_v7 = vadd.f32 %v550_v4, %v520_v31 }
 0x1c8   :  { %v552_v53 = vadd.f32 %v551_v7, %v521_v49 }
 0x1ca   :  { %v553_v55 = vrot.slane %v552_v53, 4 }
 0x1cc   :  { %v554_v15 = vadd.f32 %v553_v55, %v552_v53 }
 0x1ce   :  { %v555_v17 = vrot.slane %v554_v15, 2 }
 0x1d0   :  { %v556_v56 = vadd.f32 %v555_v17, %v554_v15 }
 0x1d2   :  { %v557_v24 = vrot.slane %v556_v56, 1 }
 0x1d4   :  { %v558_v60 = vadd.f32 %v557_v24, %v556_v56 }
 0x1d6   :  { %v559_v20 = vmul.f32 0.00390625, %v558_v60 }
 0x1d8   :  { %v561_v25 = vadd.f32 1e-05, %v559_v20 }
 0x1da   :  { %1356 = vrsqrt.f32 %v561_v25 }
 0x1e4   :  { %v1357_v32 = vpop.eup %1356 }
 0x1e5   :  { %v563_v2 = vmul.f32 %v1357_v32, %v560_v26 }
 0x1e7   :  { %v2094_v8 = vrot.slane %v563_v2, %v567_v35 }
 0x1e9   :  { %v570_v40 = vmul.f32 %v2094_v8, %v1948_v18  ;;  %v571_v12 = vmul.f32 %v2094_v8, %v1952_v27  ;;  %v572_v16 = vmul.f32 %v2094_v8, %v1956_v41  ;;  %v573_v48 = vmul.f32 %v2094_v8, %v1964_v50 }
 0x1ea   :  { %v601_v21 = vmul.f32 %v2094_v8, %v1944_v0  ;;  %v574_v18 = vmul.f32 %v2094_v8, %v1968_v9  ;;  %v575_v3 = vmul.f32 %v2094_v8, %v1974_v10  ;;  %v586_v58 = vmul.f32 %v2094_v8, %v2040_v30 }
 0x1eb   :  { %v609_v51 = vadd.f32 %v2103_v44, %v570_v40  ;;  %v610_v27 = vadd.f32 %v2103_v44, %v571_v12  ;;  %v587_v41 = vmul.f32 %v2094_v8, %v2046_v46  ;;  %v588_v50 = vmul.f32 %v2094_v8, %v2052_v5 }
 0x1ec   :  { %v589_v0 = vmul.f32 %v2094_v8, %v477_v54  ;;  %v590_v9 = vmul.f32 %v2094_v8, %v1904_v36  ;;  %v591_v29 = vmul.f32 %v2094_v8, %v1908_v37  ;;  %v592_v10 = vmul.f32 %v2094_v8, %v1912_v39 }
 0x1ed   :  { %v641_v59 = vpack.c.bf16 %v610_v27, %v609_v51  ;;  %v593_v30 = vmul.f32 %v2094_v8, %v1916_v42  ;;  %v611_v46 = vadd.f32 %v2103_v44, %v572_v16  ;;  %v612_v31 = vadd.f32 %v2103_v44, %v573_v48 }
 0x1ee   :  { %v594_v5 = vmul.f32 %v2094_v8, %v1920_v43  ;;  %v595_v36 = vmul.f32 %v2094_v8, %v1924_v34  ;;  %v596_v37 = vmul.f32 %v2094_v8, %v1928_v38  ;;  %v597_v54 = vmul.f32 %v2094_v8, %v1932_v47 }
 0x1ef   :  { %798 = vmatmul.mubr.bf16.vlgmr.msra.gmra.mrb[0].mxu1 %v641_v59  ;;  %v598_v39 = vmul.f32 %v2094_v8, %v1935_v45  ;;  %v599_v42 = vmul.f32 %v2094_v8, %v1938_v52  ;;  %v2148_v43 = vadd.f32 %v2103_v44, %v586_v58  ;;  %v2151_v34 = vadd.f32 %v2103_v44, %v587_v41 }
 0x1f0   :  { %807 = vmatprep.mubr.bf16.mxu1 %v1446_v23  ;;  %v600_v38 = vmul.f32 %v2094_v8, %v1941_v61  ;;  %v2156_v47 = vadd.f32 %v2103_v44, %v588_v50  ;;  %v2159_v4 = vadd.f32 %v2103_v44, %v589_v0  ;;  %v2162_v45 = vadd.f32 %v2103_v44, %v590_v9 }
 0x1f1   :  { %v642_v52 = vpack.c.bf16 %v612_v31, %v611_v46  ;;  %v649_v49 = vpack.c.bf16 %v2151_v34, %v2148_v43  ;;  %v2167_v7 = vadd.f32 %v2103_v44, %v591_v29  ;;  %v2170_v53 = vadd.f32 %v2103_v44, %v592_v10 }
 0x1f2   :  { %v650_v61 = vpack.c.bf16 %v2159_v4, %v2156_v47  ;;  %v2175_v55 = vadd.f32 %v2103_v44, %v593_v30  ;;  %v2178_v15 = vadd.f32 %v2103_v44, %v594_v5  ;;  %v2181_v17 = vadd.f32 %v2103_v44, %v595_v36 }
 0x1f3   :  { %v651_v56 = vpack.c.bf16 %v2167_v7, %v2162_v45  ;;  %v2186_v24 = vadd.f32 %v2103_v44, %v596_v37  ;;  %v636_v60 = vadd.f32 %v2103_v44, %v597_v54  ;;  %v2190_v20 = vadd.f32 %v2103_v44, %v598_v39 }
 0x1f4   :  { %v652_v25 = vpack.c.bf16 %v2175_v55, %v2170_v53  ;;  %v653_v63 = vpack.c.bf16 %v2181_v17, %v2178_v15  ;;  %v638_v26 = vadd.f32 %v2103_v44, %v599_v42  ;;  %v639_v32 = vadd.f32 %v2103_v44, %v600_v38  ;;  %v1361_v15 = vld [vmem:[%s2525_s0 + $0x18] sm:$0xff] }
 0x1f5   :  { %v654_v2 = vpack.c.bf16 %v636_v60, %v2186_v24  ;;  %v640_v40 = vadd.f32 %v2103_v44, %v601_v21  ;;  %v613_v48 = vadd.f32 %v2103_v44, %v574_v18  ;;  %v614_v51 = vadd.f32 %v2103_v44, %v575_v3 }
 0x1f6   :  { %v655_v12 = vpack.c.bf16 %v638_v26, %v2190_v20  ;;  %v576_v27 = vmul.f32 %v2094_v8, %v1980_v14  ;;  %v577_v58 = vmul.f32 %v2094_v8, %v1986_v57  ;;  %v578_v0 = vmul.f32 %v2094_v8, %v1992_v62 }
 0x1f7   :  { %808 = vmatmul.mubr.bf16.gmra.mrb[4].mxu1 %v642_v52  ;;  %v656_v16 = vpack.c.bf16 %v640_v40, %v639_v32  ;;  %v643_v41 = vpack.c.bf16 %v614_v51, %v613_v48  ;;  %v579_v18 = vmul.f32 %v2094_v8, %v1998_v1  ;;  %v580_v9 = vmul.f32 %v2094_v8, %v2004_v6  ;;  %v1363_v51 = vld [vmem:[%s2525_s0 + $0x28] sm:$0xff] }
 0x1f8   :  { %817 = vmatprep.mubr.bf16.mxu1 %v1446_v23  ;;  %v615_v21 = vadd.f32 %v2103_v44, %v576_v27  ;;  %v616_v50 = vadd.f32 %v2103_v44, %v577_v58  ;;  %v617_v14 = vadd.f32 %v2103_v44, %v578_v0  ;;  %v581_v29 = vmul.f32 %v2094_v8, %v2010_v11 }
 0x1f9   :  { %v618_v57 = vadd.f32 %v2103_v44, %v579_v18  ;;  %v619_v62 = vadd.f32 %v2103_v44, %v580_v9  ;;  %v582_v10 = vmul.f32 %v2094_v8, %v2016_v13  ;;  %v583_v30 = vmul.f32 %v2094_v8, %v2022_v19 }
 0x1fa   :  { %v644_v3 = vpack.c.bf16 %v616_v50, %v615_v21  ;;  %v620_v1 = vadd.f32 %v2103_v44, %v581_v29  ;;  %v584_v31 = vmul.f32 %v2094_v8, %v2028_v22  ;;  %v585_v5 = vmul.f32 %v2094_v8, %v2034_v28  ;;  %v673_v28 = vld [vmem:[%s2529_s4] sm:$0x3]  ;;  %v1365_v50 = vld [vmem:[%s2525_s0 + $0x38] sm:$0xff] }
 0x1fb   :  { %v645_v59 = vpack.c.bf16 %v618_v57, %v617_v14  ;;  %v621_v6 = vadd.f32 %v2103_v44, %v582_v10  ;;  %v622_v11 = vadd.f32 %v2103_v44, %v583_v30  ;;  %v681_v22 = vsub.s32 1, %v2086_v33  ;;  %v1358_v33 = vld [vmem:[%s2525_s0] sm:$0xff] }
 0x1fc   :  { %v646_v46 = vpack.c.bf16 %v620_v1, %v619_v62  ;;  %v623_v13 = vadd.f32 %v2103_v44, %v584_v31  ;;  %v624_v19 = vadd.f32 %v2103_v44, %v585_v5  ;;  %v2253_v8 = vrot.slane %v673_v28, %v567_v35  ;;  %v1366_v30 = vld [vmem:[%s2525_s0 + $0x40] sm:$0xff] }
 0x1fd   :  { %v647_v36 = vpack.c.bf16 %v622_v11, %v621_v6  ;;  %v2255_v44 = vrot.slane %v673_v28, %v681_v22  ;;  %v1367_v11 = vld [vmem:[%s2525_s0 + $0x48] sm:$0xff] }
 0x1fe   :  { %v648_v37 = vpack.c.bf16 %v624_v19, %v623_v13  ;;  %v1369_v19 = vld [vmem:[%s2525_s0 + $0x58] sm:$0xff] }
 0x1ff   :  { %818 = vmatmul.mubr.bf16.gmra.mrb[8].mxu1 %v643_v41  ;;  %v1364_v41 = vld [vmem:[%s2525_s0 + $0x30] sm:$0xff] }
 0x200   :  { %827 = vmatprep.mubr.bf16.mxu1 %v1446_v23 }
 0x207   :  { %828 = vmatmul.mubr.bf16.gmra.mrb[12].mxu1 %v644_v3 }
 0x208   :  { %837 = vmatprep.mubr.bf16.mxu1 %v1446_v23 }
 0x20f   :  { %838 = vmatmul.mubr.bf16.gmra.mrb[16].mxu1 %v645_v59 }
 0x210   :  { %847 = vmatprep.mubr.bf16.mxu1 %v1446_v23 }
 0x217   :  { %848 = vmatmul.mubr.bf16.gmra.mrb[20].mxu1 %v646_v46 }
 0x218   :  { %857 = vmatprep.mubr.bf16.mxu1 %v1446_v23 }
 0x21f   :  { %858 = vmatmul.mubr.bf16.gmra.mrb[24].mxu1 %v647_v36  ;;  %v1368_v36 = vld [vmem:[%s2525_s0 + $0x50] sm:$0xff] }
 0x220   :  { %867 = vmatprep.mubr.bf16.mxu1 %v1446_v23 }
 0x227   :  { %868 = vmatmul.mubr.bf16.gmra.mrb[28].mxu1 %v648_v37 }
 0x228   :  { %877 = vmatprep.mubr.bf16.mxu1 %v1446_v23 }
 0x22f   :  { %878 = vmatmul.mubr.bf16.gmra.mrb[32].mxu1 %v649_v49  ;;  %v1359_v49 = vld [vmem:[%s2525_s0 + $0x8] sm:$0xff] }
 0x230   :  { %887 = vmatprep.mubr.bf16.mxu1 %v1446_v23 }
 0x237   :  { %888 = vmatmul.mubr.bf16.gmra.mrb[36].mxu1 %v650_v61  ;;  %v1360_v61 = vld [vmem:[%s2525_s0 + $0x10] sm:$0xff] }
 0x238   :  { %897 = vmatprep.mubr.bf16.mxu1 %v1446_v23 }
 0x23f   :  { %898 = vmatmul.mubr.bf16.gmra.mrb[40].mxu1 %v651_v56 }
 0x240   :  { %907 = vmatprep.mubr.bf16.mxu1 %v1446_v23 }
 0x247   :  { %908 = vmatmul.mubr.bf16.gmra.mrb[44].mxu1 %v652_v25 }
 0x248   :  { %917 = vmatprep.mubr.bf16.mxu1 %v1446_v23 }
 0x24f   :  { %918 = vmatmul.mubr.bf16.gmra.mrb[48].mxu1 %v653_v63 }
 0x250   :  { %927 = vmatprep.mubr.bf16.mxu1 %v1446_v23 }
 0x257   :  { %928 = vmatmul.mubr.bf16.gmra.mrb[52].mxu1 %v654_v2 }
 0x258   :  { %937 = vmatprep.mubr.bf16.mxu1 %v1446_v23 }
 0x25f   :  { %938 = vmatmul.mubr.bf16.gmra.mrb[56].mxu1 %v655_v12  ;;  %v1362_v12 = vld [vmem:[%s2525_s0 + $0x20] sm:$0xff] }
 0x260   :  { %947 = vmatprep.mubr.bf16.mxu1 %v1446_v23 }
 0x267   :  { %948 = vmatmul.mubr.bf16.gmra.mrb[60].mxu1 %v656_v16 }
 0x2c2   :  { %v799_v54 = vpop.f32.mrb[0].mxu1 }
 0x2c3   :  { %v800_v39 = vadd.f32 %v799_v54, %v2253_v8  ;;  %v801_v42 = vpop.f32.mrb[1].mxu1 }
 0x2c4   :  { %v802_v43 = vadd.f32 %v801_v42, %v2255_v44  ;;  %v803_v23 = vpop.f32.mrb[2].mxu1 }
 0x2c5   :  { %v958_v34 = vmax.f32 %v800_v39, 0.0  ;;  %v804_v38 = vadd.f32 %v803_v23, %v2253_v8  ;;  %v805_v47 = vpop.f32.mrb[3].mxu1 }
 0x2c6   :  { %v959_v4 = vmax.f32 %v802_v43, 0.0  ;;  %v806_v45 = vadd.f32 %v805_v47, %v2255_v44 }
 0x2c7   :  { %v1022_v35 = vadd.f32 %v1358_v33, %v958_v34  ;;  %v960_v52 = vmax.f32 %v804_v38, 0.0 }
 0x2c8   :  { %v1023_v7 = vadd.f32 %v1359_v49, %v959_v4  ;;  %v961_v53 = vmax.f32 %v806_v45, 0.0  ;;  %v1370_v4 = vld [vmem:[%s2525_s0 + $0x60] sm:$0xff] }
 0x2c9   :  { %1086 = vst [vmem:[#allocation2] sm:$0xff] %v1022_v35  ;;  %v1024_v55 = vadd.f32 %v1360_v61, %v960_v52  ;;  %v1371_v35 = vld [vmem:[%s2525_s0 + $0x68] sm:$0xff]  ;;  %v1373_v61 = vld [vmem:[%s2525_s0 + $0x78] sm:$0xff] }
 0x2ca   :  { %1087 = vst [vmem:[#allocation2 + $0x8] sm:$0xff] %v1023_v7  ;;  %v1025_v17 = vadd.f32 %v1361_v15, %v961_v53  ;;  %v809_v56 = vpop.f32.mrb[4].mxu1  ;;  %v1372_v7 = vld [vmem:[%s2525_s0 + $0x70] sm:$0xff] }
 0x2cb   :  { %1088 = vst [vmem:[#allocation2 + $0x10] sm:$0xff] %v1024_v55  ;;  %v810_v24 = vadd.f32 %v809_v56, %v2253_v8  ;;  %v811_v60 = vpop.f32.mrb[5].mxu1 }
 0x2cc   :  { %1089 = vst [vmem:[#allocation2 + $0x18] sm:$0xff] %v1025_v17  ;;  %v812_v20 = vadd.f32 %v811_v60, %v2255_v44  ;;  %v813_v25 = vpop.f32.mrb[6].mxu1 }
 0x2cd   :  { %v962_v63 = vmax.f32 %v810_v24, 0.0  ;;  %v814_v26 = vadd.f32 %v813_v25, %v2253_v8  ;;  %v815_v32 = vpop.f32.mrb[7].mxu1 }
 0x2ce   :  { %v963_v2 = vmax.f32 %v812_v20, 0.0  ;;  %v816_v40 = vadd.f32 %v815_v32, %v2255_v44 }
 0x2cf   :  { %v1026_v16 = vadd.f32 %v1362_v12, %v962_v63  ;;  %v964_v48 = vmax.f32 %v814_v26, 0.0 }
 0x2d0   :  { %v1027_v27 = vadd.f32 %v1363_v51, %v963_v2  ;;  %v965_v58 = vmax.f32 %v816_v40, 0.0  ;;  %v1374_v2 = vld [vmem:[%s2525_s0 + $0x80] sm:$0xff] }
 0x2d1   :  { %1090 = vst [vmem:[#allocation2 + $0x20] sm:$0xff] %v1026_v16  ;;  %v1028_v21 = vadd.f32 %v1364_v41, %v964_v48  ;;  %v1375_v16 = vld [vmem:[%s2525_s0 + $0x88] sm:$0xff]  ;;  %v1377_v41 = vld [vmem:[%s2525_s0 + $0x98] sm:$0xff] }
 0x2d2   :  { %1091 = vst [vmem:[#allocation2 + $0x28] sm:$0xff] %v1027_v27  ;;  %v1029_v0 = vadd.f32 %v1365_v50, %v965_v58  ;;  %v819_v18 = vpop.f32.mrb[8].mxu1  ;;  %v1376_v27 = vld [vmem:[%s2525_s0 + $0x90] sm:$0xff] }
 0x2d3   :  { %1092 = vst [vmem:[#allocation2 + $0x30] sm:$0xff] %v1028_v21  ;;  %v820_v3 = vadd.f32 %v819_v18, %v2253_v8  ;;  %v821_v14 = vpop.f32.mrb[9].mxu1 }
 0x2d4   :  { %1093 = vst [vmem:[#allocation2 + $0x38] sm:$0xff] %v1029_v0  ;;  %v822_v57 = vadd.f32 %v821_v14, %v2255_v44  ;;  %v823_v9 = vpop.f32.mrb[10].mxu1 }
 0x2d5   :  { %v966_v29 = vmax.f32 %v820_v3, 0.0  ;;  %v824_v59 = vadd.f32 %v823_v9, %v2253_v8  ;;  %v825_v62 = vpop.f32.mrb[11].mxu1 }
 0x2d6   :  { %v967_v1 = vmax.f32 %v822_v57, 0.0  ;;  %v826_v10 = vadd.f32 %v825_v62, %v2255_v44 }
 0x2d7   :  { %v1030_v46 = vadd.f32 %v1366_v30, %v966_v29  ;;  %v968_v6 = vmax.f32 %v824_v59, 0.0 }
 0x2d8   :  { %v1031_v31 = vadd.f32 %v1367_v11, %v967_v1  ;;  %v969_v5 = vmax.f32 %v826_v10, 0.0  ;;  %v1378_v1 = vld [vmem:[%s2525_s0 + $0xa0] sm:$0xff] }
 0x2d9   :  { %1094 = vst [vmem:[#allocation2 + $0x40] sm:$0xff] %v1030_v46  ;;  %v1032_v13 = vadd.f32 %v1368_v36, %v968_v6  ;;  %v1379_v46 = vld [vmem:[%s2525_s0 + $0xa8] sm:$0xff]  ;;  %v1381_v36 = vld [vmem:[%s2525_s0 + $0xb8] sm:$0xff] }
 0x2da   :  { %1095 = vst [vmem:[#allocation2 + $0x48] sm:$0xff] %v1031_v31  ;;  %v1033_v37 = vadd.f32 %v1369_v19, %v969_v5  ;;  %v829_v22 = vpop.f32.mrb[12].mxu1  ;;  %v1380_v31 = vld [vmem:[%s2525_s0 + $0xb0] sm:$0xff] }
 0x2db   :  { %1096 = vst [vmem:[#allocation2 + $0x50] sm:$0xff] %v1032_v13  ;;  %v830_v28 = vadd.f32 %v829_v22, %v2253_v8  ;;  %v831_v54 = vpop.f32.mrb[13].mxu1 }
 0x2dc   :  { %1097 = vst [vmem:[#allocation2 + $0x58] sm:$0xff] %v1033_v37  ;;  %v832_v39 = vadd.f32 %v831_v54, %v2255_v44  ;;  %v833_v42 = vpop.f32.mrb[14].mxu1 }
 0x2dd   :  { %v970_v43 = vmax.f32 %v830_v28, 0.0  ;;  %v834_v23 = vadd.f32 %v833_v42, %v2253_v8  ;;  %v835_v34 = vpop.f32.mrb[15].mxu1 }
 0x2de   :  { %v971_v38 = vmax.f32 %v832_v39, 0.0  ;;  %v836_v47 = vadd.f32 %v835_v34, %v2255_v44 }
 0x2df   :  { %v1034_v45 = vadd.f32 %v1370_v4, %v970_v43  ;;  %v972_v33 = vmax.f32 %v834_v23, 0.0 }
 0x2e0   :  { %v1035_v52 = vadd.f32 %v1371_v35, %v971_v38  ;;  %v973_v49 = vmax.f32 %v836_v47, 0.0  ;;  %v1382_v38 = vld [vmem:[%s2525_s0 + $0xc0] sm:$0xff] }
 0x2e1   :  { %1098 = vst [vmem:[#allocation2 + $0x60] sm:$0xff] %v1034_v45  ;;  %v1036_v53 = vadd.f32 %v1372_v7, %v972_v33  ;;  %v1383_v45 = vld [vmem:[%s2525_s0 + $0xc8] sm:$0xff]  ;;  %v1385_v7 = vld [vmem:[%s2525_s0 + $0xd8] sm:$0xff] }
 0x2e2   :  { %1099 = vst [vmem:[#allocation2 + $0x68] sm:$0xff] %v1035_v52  ;;  %v1037_v55 = vadd.f32 %v1373_v61, %v973_v49  ;;  %v839_v15 = vpop.f32.mrb[16].mxu1  ;;  %v1384_v52 = vld [vmem:[%s2525_s0 + $0xd0] sm:$0xff] }
 0x2e3   :  { %1100 = vst [vmem:[#allocation2 + $0x70] sm:$0xff] %v1036_v53  ;;  %v840_v17 = vadd.f32 %v839_v15, %v2253_v8  ;;  %v841_v56 = vpop.f32.mrb[17].mxu1 }
 0x2e4   :  { %1101 = vst [vmem:[#allocation2 + $0x78] sm:$0xff] %v1037_v55  ;;  %v842_v24 = vadd.f32 %v841_v56, %v2255_v44  ;;  %v843_v60 = vpop.f32.mrb[18].mxu1 }
 0x2e5   :  { %v974_v20 = vmax.f32 %v840_v17, 0.0  ;;  %v844_v25 = vadd.f32 %v843_v60, %v2253_v8  ;;  %v845_v63 = vpop.f32.mrb[19].mxu1 }
 0x2e6   :  { %v975_v26 = vmax.f32 %v842_v24, 0.0  ;;  %v846_v32 = vadd.f32 %v845_v63, %v2255_v44 }
 0x2e7   :  { %v1038_v40 = vadd.f32 %v1374_v2, %v974_v20  ;;  %v976_v12 = vmax.f32 %v844_v25, 0.0 }
 0x2e8   :  { %v1039_v48 = vadd.f32 %v1375_v16, %v975_v26  ;;  %v977_v51 = vmax.f32 %v846_v32, 0.0  ;;  %v1386_v26 = vld [vmem:[%s2525_s0 + $0xe0] sm:$0xff] }
 0x2e9   :  { %1102 = vst [vmem:[#allocation2 + $0x80] sm:$0xff] %v1038_v40  ;;  %v1040_v58 = vadd.f32 %v1376_v27, %v976_v12  ;;  %v1387_v40 = vld [vmem:[%s2525_s0 + $0xe8] sm:$0xff]  ;;  %v1389_v27 = vld [vmem:[%s2525_s0 + $0xf8] sm:$0xff] }
 0x2ea   :  { %1103 = vst [vmem:[#allocation2 + $0x88] sm:$0xff] %v1039_v48  ;;  %v1041_v21 = vadd.f32 %v1377_v41, %v977_v51  ;;  %v849_v50 = vpop.f32.mrb[20].mxu1  ;;  %v1388_v48 = vld [vmem:[%s2525_s0 + $0xf0] sm:$0xff] }
 0x2eb   :  { %1104 = vst [vmem:[#allocation2 + $0x90] sm:$0xff] %v1040_v58  ;;  %v850_v0 = vadd.f32 %v849_v50, %v2253_v8  ;;  %v851_v18 = vpop.f32.mrb[21].mxu1 }
 0x2ec   :  { %1105 = vst [vmem:[#allocation2 + $0x98] sm:$0xff] %v1041_v21  ;;  %v852_v3 = vadd.f32 %v851_v18, %v2255_v44  ;;  %v853_v14 = vpop.f32.mrb[22].mxu1 }
 0x2ed   :  { %v978_v57 = vmax.f32 %v850_v0, 0.0  ;;  %v854_v9 = vadd.f32 %v853_v14, %v2253_v8  ;;  %v855_v29 = vpop.f32.mrb[23].mxu1 }
 0x2ee   :  { %v979_v59 = vmax.f32 %v852_v3, 0.0  ;;  %v856_v62 = vadd.f32 %v855_v29, %v2255_v44 }
 0x2ef   :  { %v1042_v10 = vadd.f32 %v1378_v1, %v978_v57  ;;  %v980_v30 = vmax.f32 %v854_v9, 0.0 }
 0x2f0   :  { %v1043_v6 = vadd.f32 %v1379_v46, %v979_v59  ;;  %v981_v11 = vmax.f32 %v856_v62, 0.0  ;;  %v1390_v59 = vld [vmem:[%s2525_s0 + $0x100] sm:$0xff] }
 0x2f1   :  { %1106 = vst [vmem:[#allocation2 + $0xa0] sm:$0xff] %v1042_v10  ;;  %v1044_v5 = vadd.f32 %v1380_v31, %v980_v30  ;;  %v1391_v10 = vld [vmem:[%s2525_s0 + $0x108] sm:$0xff]  ;;  %v1393_v31 = vld [vmem:[%s2525_s0 + $0x118] sm:$0xff] }
 0x2f2   :  { %1107 = vst [vmem:[#allocation2 + $0xa8] sm:$0xff] %v1043_v6  ;;  %v1045_v13 = vadd.f32 %v1381_v36, %v981_v11  ;;  %v859_v19 = vpop.f32.mrb[24].mxu1  ;;  %v1392_v6 = vld [vmem:[%s2525_s0 + $0x110] sm:$0xff] }
 0x2f3   :  { %1108 = vst [vmem:[#allocation2 + $0xb0] sm:$0xff] %v1044_v5  ;;  %v860_v37 = vadd.f32 %v859_v19, %v2253_v8  ;;  %v861_v22 = vpop.f32.mrb[25].mxu1 }
 0x2f4   :  { %1109 = vst [vmem:[#allocation2 + $0xb8] sm:$0xff] %v1045_v13  ;;  %v862_v28 = vadd.f32 %v861_v22, %v2255_v44  ;;  %v863_v54 = vpop.f32.mrb[26].mxu1 }
 0x2f5   :  { %v982_v39 = vmax.f32 %v860_v37, 0.0  ;;  %v864_v42 = vadd.f32 %v863_v54, %v2253_v8  ;;  %v865_v43 = vpop.f32.mrb[27].mxu1 }
 0x2f6   :  { %v983_v23 = vmax.f32 %v862_v28, 0.0  ;;  %v866_v34 = vadd.f32 %v865_v43, %v2255_v44 }
 0x2f7   :  { %v1046_v47 = vadd.f32 %v1382_v38, %v982_v39  ;;  %v984_v4 = vmax.f32 %v864_v42, 0.0 }
 0x2f8   :  { %v1047_v33 = vadd.f32 %v1383_v45, %v983_v23  ;;  %v985_v35 = vmax.f32 %v866_v34, 0.0  ;;  %v1394_v23 = vld [vmem:[%s2525_s0 + $0x120] sm:$0xff] }
 0x2f9   :  { %1110 = vst [vmem:[#allocation2 + $0xc0] sm:$0xff] %v1046_v47  ;;  %v1048_v49 = vadd.f32 %v1384_v52, %v984_v4  ;;  %v1395_v47 = vld [vmem:[%s2525_s0 + $0x128] sm:$0xff]  ;;  %v1397_v52 = vld [vmem:[%s2525_s0 + $0x138] sm:$0xff] }
 0x2fa   :  { %1111 = vst [vmem:[#allocation2 + $0xc8] sm:$0xff] %v1047_v33  ;;  %v1049_v53 = vadd.f32 %v1385_v7, %v985_v35  ;;  %v869_v61 = vpop.f32.mrb[28].mxu1  ;;  %v1396_v33 = vld [vmem:[%s2525_s0 + $0x130] sm:$0xff] }
 0x2fb   :  { %1112 = vst [vmem:[#allocation2 + $0xd0] sm:$0xff] %v1048_v49  ;;  %v870_v55 = vadd.f32 %v869_v61, %v2253_v8  ;;  %v871_v15 = vpop.f32.mrb[29].mxu1 }
 0x2fc   :  { %1113 = vst [vmem:[#allocation2 + $0xd8] sm:$0xff] %v1049_v53  ;;  %v872_v17 = vadd.f32 %v871_v15, %v2255_v44  ;;  %v873_v56 = vpop.f32.mrb[30].mxu1 }
 0x2fd   :  { %v986_v24 = vmax.f32 %v870_v55, 0.0  ;;  %v874_v60 = vadd.f32 %v873_v56, %v2253_v8  ;;  %v875_v20 = vpop.f32.mrb[31].mxu1 }
 0x2fe   :  { %v987_v25 = vmax.f32 %v872_v17, 0.0  ;;  %v876_v63 = vadd.f32 %v875_v20, %v2255_v44 }
 0x2ff   :  { %v1050_v32 = vadd.f32 %v1386_v26, %v986_v24  ;;  %v988_v2 = vmax.f32 %v874_v60, 0.0 }
 0x300   :  { %v1051_v12 = vadd.f32 %v1387_v40, %v987_v25  ;;  %v989_v16 = vmax.f32 %v876_v63, 0.0  ;;  %v1398_v25 = vld [vmem:[%s2525_s0 + $0x140] sm:$0xff] }
 0x301   :  { %1114 = vst [vmem:[#allocation2 + $0xe0] sm:$0xff] %v1050_v32  ;;  %v1052_v51 = vadd.f32 %v1388_v48, %v988_v2  ;;  %v1399_v32 = vld [vmem:[%s2525_s0 + $0x148] sm:$0xff]  ;;  %v1401_v48 = vld [vmem:[%s2525_s0 + $0x158] sm:$0xff] }
 0x302   :  { %1115 = vst [vmem:[#allocation2 + $0xe8] sm:$0xff] %v1051_v12  ;;  %v1053_v58 = vadd.f32 %v1389_v27, %v989_v16  ;;  %v879_v41 = vpop.f32.mrb[32].mxu1  ;;  %v1400_v12 = vld [vmem:[%s2525_s0 + $0x150] sm:$0xff] }
 0x303   :  { %1116 = vst [vmem:[#allocation2 + $0xf0] sm:$0xff] %v1052_v51  ;;  %v880_v21 = vadd.f32 %v879_v41, %v2253_v8  ;;  %v881_v50 = vpop.f32.mrb[33].mxu1 }
 0x304   :  { %1117 = vst [vmem:[#allocation2 + $0xf8] sm:$0xff] %v1053_v58  ;;  %v882_v0 = vadd.f32 %v881_v50, %v2255_v44  ;;  %v883_v18 = vpop.f32.mrb[34].mxu1 }
 0x305   :  { %v990_v3 = vmax.f32 %v880_v21, 0.0  ;;  %v884_v14 = vadd.f32 %v883_v18, %v2253_v8  ;;  %v885_v57 = vpop.f32.mrb[35].mxu1 }
 0x306   :  { %v991_v9 = vmax.f32 %v882_v0, 0.0  ;;  %v886_v29 = vadd.f32 %v885_v57, %v2255_v44 }
 0x307   :  { %v1054_v62 = vadd.f32 %v1390_v59, %v990_v3  ;;  %v992_v1 = vmax.f32 %v884_v14, 0.0 }
 0x308   :  { %v1055_v30 = vadd.f32 %v1391_v10, %v991_v9  ;;  %v993_v46 = vmax.f32 %v886_v29, 0.0  ;;  %v1402_v9 = vld [vmem:[%s2525_s0 + $0x160] sm:$0xff] }
 0x309   :  { %1118 = vst [vmem:[#allocation2 + $0x100] sm:$0xff] %v1054_v62  ;;  %v1056_v11 = vadd.f32 %v1392_v6, %v992_v1  ;;  %v1403_v62 = vld [vmem:[%s2525_s0 + $0x168] sm:$0xff]  ;;  %v1405_v6 = vld [vmem:[%s2525_s0 + $0x178] sm:$0xff] }
 0x30a   :  { %1119 = vst [vmem:[#allocation2 + $0x108] sm:$0xff] %v1055_v30  ;;  %v1057_v5 = vadd.f32 %v1393_v31, %v993_v46  ;;  %v889_v36 = vpop.f32.mrb[36].mxu1  ;;  %v1404_v30 = vld [vmem:[%s2525_s0 + $0x170] sm:$0xff] }
 0x30b   :  { %1120 = vst [vmem:[#allocation2 + $0x110] sm:$0xff] %v1056_v11  ;;  %v890_v13 = vadd.f32 %v889_v36, %v2253_v8  ;;  %v891_v19 = vpop.f32.mrb[37].mxu1 }
 0x30c   :  { %1121 = vst [vmem:[#allocation2 + $0x118] sm:$0xff] %v1057_v5  ;;  %v892_v37 = vadd.f32 %v891_v19, %v2255_v44  ;;  %v893_v22 = vpop.f32.mrb[38].mxu1 }
 0x30d   :  { %v994_v28 = vmax.f32 %v890_v13, 0.0  ;;  %v894_v54 = vadd.f32 %v893_v22, %v2253_v8  ;;  %v895_v39 = vpop.f32.mrb[39].mxu1 }
 0x30e   :  { %v995_v42 = vmax.f32 %v892_v37, 0.0  ;;  %v896_v43 = vadd.f32 %v895_v39, %v2255_v44 }
 0x30f   :  { %v1058_v34 = vadd.f32 %v1394_v23, %v994_v28  ;;  %v996_v38 = vmax.f32 %v894_v54, 0.0 }
 0x310   :  { %v1059_v4 = vadd.f32 %v1395_v47, %v995_v42  ;;  %v997_v45 = vmax.f32 %v896_v43, 0.0  ;;  %v1406_v42 = vld [vmem:[%s2525_s0 + $0x180] sm:$0xff] }
 0x311   :  { %1122 = vst [vmem:[#allocation2 + $0x120] sm:$0xff] %v1058_v34  ;;  %v1060_v35 = vadd.f32 %v1396_v33, %v996_v38  ;;  %v1407_v34 = vld [vmem:[%s2525_s0 + $0x188] sm:$0xff]  ;;  %v1409_v33 = vld [vmem:[%s2525_s0 + $0x198] sm:$0xff] }
 0x312   :  { %1123 = vst [vmem:[#allocation2 + $0x128] sm:$0xff] %v1059_v4  ;;  %v1061_v49 = vadd.f32 %v1397_v52, %v997_v45  ;;  %v899_v7 = vpop.f32.mrb[40].mxu1  ;;  %v1408_v4 = vld [vmem:[%s2525_s0 + $0x190] sm:$0xff] }
 0x313   :  { %1124 = vst [vmem:[#allocation2 + $0x130] sm:$0xff] %v1060_v35  ;;  %v900_v53 = vadd.f32 %v899_v7, %v2253_v8  ;;  %v901_v61 = vpop.f32.mrb[41].mxu1 }
 0x314   :  { %1125 = vst [vmem:[#allocation2 + $0x138] sm:$0xff] %v1061_v49  ;;  %v902_v55 = vadd.f32 %v901_v61, %v2255_v44  ;;  %v903_v15 = vpop.f32.mrb[42].mxu1 }
 0x315   :  { %v998_v17 = vmax.f32 %v900_v53, 0.0  ;;  %v904_v56 = vadd.f32 %v903_v15, %v2253_v8  ;;  %v905_v24 = vpop.f32.mrb[43].mxu1 }
 0x316   :  { %v999_v60 = vmax.f32 %v902_v55, 0.0  ;;  %v906_v20 = vadd.f32 %v905_v24, %v2255_v44 }
 0x317   :  { %v1062_v63 = vadd.f32 %v1398_v25, %v998_v17  ;;  %v1000_v26 = vmax.f32 %v904_v56, 0.0 }
 0x318   :  { %v1063_v2 = vadd.f32 %v1399_v32, %v999_v60  ;;  %v1001_v40 = vmax.f32 %v906_v20, 0.0  ;;  %v1410_v60 = vld [vmem:[%s2525_s0 + $0x1a0] sm:$0xff] }
 0x319   :  { %1126 = vst [vmem:[#allocation2 + $0x140] sm:$0xff] %v1062_v63  ;;  %v1064_v16 = vadd.f32 %v1400_v12, %v1000_v26  ;;  %v1411_v63 = vld [vmem:[%s2525_s0 + $0x1a8] sm:$0xff]  ;;  %v1413_v12 = vld [vmem:[%s2525_s0 + $0x1b8] sm:$0xff] }
 0x31a   :  { %1127 = vst [vmem:[#allocation2 + $0x148] sm:$0xff] %v1063_v2  ;;  %v1065_v51 = vadd.f32 %v1401_v48, %v1001_v40  ;;  %v909_v27 = vpop.f32.mrb[44].mxu1  ;;  %v1412_v2 = vld [vmem:[%s2525_s0 + $0x1b0] sm:$0xff] }
 0x31b   :  { %1128 = vst [vmem:[#allocation2 + $0x150] sm:$0xff] %v1064_v16  ;;  %v910_v58 = vadd.f32 %v909_v27, %v2253_v8  ;;  %v911_v41 = vpop.f32.mrb[45].mxu1 }
 0x31c   :  { %1129 = vst [vmem:[#allocation2 + $0x158] sm:$0xff] %v1065_v51  ;;  %v912_v21 = vadd.f32 %v911_v41, %v2255_v44  ;;  %v913_v50 = vpop.f32.mrb[46].mxu1 }
 0x31d   :  { %v1002_v0 = vmax.f32 %v910_v58, 0.0  ;;  %v914_v18 = vadd.f32 %v913_v50, %v2253_v8  ;;  %v915_v3 = vpop.f32.mrb[47].mxu1 }
 0x31e   :  { %v1003_v14 = vmax.f32 %v912_v21, 0.0  ;;  %v916_v57 = vadd.f32 %v915_v3, %v2255_v44 }
 0x31f   :  { %v1066_v29 = vadd.f32 %v1402_v9, %v1002_v0  ;;  %v1004_v59 = vmax.f32 %v914_v18, 0.0 }
 0x320   :  { %v1067_v1 = vadd.f32 %v1403_v62, %v1003_v14  ;;  %v1005_v10 = vmax.f32 %v916_v57, 0.0  ;;  %v1414_v14 = vld [vmem:[%s2525_s0 + $0x1c0] sm:$0xff] }
 0x321   :  { %1130 = vst [vmem:[#allocation2 + $0x160] sm:$0xff] %v1066_v29  ;;  %v1068_v46 = vadd.f32 %v1404_v30, %v1004_v59  ;;  %v1415_v29 = vld [vmem:[%s2525_s0 + $0x1c8] sm:$0xff]  ;;  %v1417_v30 = vld [vmem:[%s2525_s0 + $0x1d8] sm:$0xff] }
 0x322   :  { %1131 = vst [vmem:[#allocation2 + $0x168] sm:$0xff] %v1067_v1  ;;  %v1069_v11 = vadd.f32 %v1405_v6, %v1005_v10  ;;  %v919_v31 = vpop.f32.mrb[48].mxu1  ;;  %v1416_v1 = vld [vmem:[%s2525_s0 + $0x1d0] sm:$0xff] }
 0x323   :  { %1132 = vst [vmem:[#allocation2 + $0x170] sm:$0xff] %v1068_v46  ;;  %v920_v5 = vadd.f32 %v919_v31, %v2253_v8  ;;  %v921_v36 = vpop.f32.mrb[49].mxu1 }
 0x324   :  { %1133 = vst [vmem:[#allocation2 + $0x178] sm:$0xff] %v1069_v11  ;;  %v922_v13 = vadd.f32 %v921_v36, %v2255_v44  ;;  %v923_v19 = vpop.f32.mrb[50].mxu1 }
 0x325   :  { %v1006_v37 = vmax.f32 %v920_v5, 0.0  ;;  %v924_v22 = vadd.f32 %v923_v19, %v2253_v8  ;;  %v925_v28 = vpop.f32.mrb[51].mxu1 }
 0x326   :  { %v1007_v54 = vmax.f32 %v922_v13, 0.0  ;;  %v926_v39 = vadd.f32 %v925_v28, %v2255_v44 }
 0x327   :  { %v1070_v43 = vadd.f32 %v1406_v42, %v1006_v37  ;;  %v1008_v23 = vmax.f32 %v924_v22, 0.0 }
 0x328   :  { %v1071_v38 = vadd.f32 %v1407_v34, %v1007_v54  ;;  %v1009_v47 = vmax.f32 %v926_v39, 0.0  ;;  %v1418_v54 = vld [vmem:[%s2525_s0 + $0x1e0] sm:$0xff] }
 0x329   :  { %1134 = vst [vmem:[#allocation2 + $0x180] sm:$0xff] %v1070_v43  ;;  %v1072_v45 = vadd.f32 %v1408_v4, %v1008_v23  ;;  %v1419_v43 = vld [vmem:[%s2525_s0 + $0x1e8] sm:$0xff] }
 0x32a   :  { %1135 = vst [vmem:[#allocation2 + $0x188] sm:$0xff] %v1071_v38  ;;  %v1073_v35 = vadd.f32 %v1409_v33, %v1009_v47  ;;  %v929_v52 = vpop.f32.mrb[52].mxu1  ;;  %v1421_v38 = vld [vmem:[%s2525_s0 + $0x1f8] sm:$0xff] }
 0x32b   :  { %1136 = vst [vmem:[#allocation2 + $0x190] sm:$0xff] %v1072_v45  ;;  %v930_v49 = vadd.f32 %v929_v52, %v2253_v8  ;;  %v931_v7 = vpop.f32.mrb[53].mxu1 }
 0x32c   :  { %1137 = vst [vmem:[#allocation2 + $0x198] sm:$0xff] %v1073_v35  ;;  %v932_v53 = vadd.f32 %v931_v7, %v2255_v44  ;;  %v933_v61 = vpop.f32.mrb[54].mxu1 }
 0x32d   :  { %v1010_v55 = vmax.f32 %v930_v49, 0.0  ;;  %v934_v15 = vadd.f32 %v933_v61, %v2253_v8  ;;  %v935_v17 = vpop.f32.mrb[55].mxu1 }
 0x32e   :  { %v1011_v56 = vmax.f32 %v932_v53, 0.0  ;;  %v936_v24 = vadd.f32 %v935_v17, %v2255_v44 }
 0x32f   :  { %v1074_v20 = vadd.f32 %v1410_v60, %v1010_v55  ;;  %v1012_v25 = vmax.f32 %v934_v15, 0.0 }
 0x330   :  { %v1075_v26 = vadd.f32 %v1411_v63, %v1011_v56  ;;  %v1013_v32 = vmax.f32 %v936_v24, 0.0 }
 0x331   :  { %1138 = vst [vmem:[#allocation2 + $0x1a0] sm:$0xff] %v1074_v20  ;;  %v1076_v40 = vadd.f32 %v1412_v2, %v1012_v25 }
 0x332   :  { %1139 = vst [vmem:[#allocation2 + $0x1a8] sm:$0xff] %v1075_v26  ;;  %v1077_v16 = vadd.f32 %v1413_v12, %v1013_v32  ;;  %v939_v48 = vpop.f32.mrb[56].mxu1 }
 0x333   :  { %1140 = vst [vmem:[#allocation2 + $0x1b0] sm:$0xff] %v1076_v40  ;;  %v940_v51 = vadd.f32 %v939_v48, %v2253_v8  ;;  %v941_v27 = vpop.f32.mrb[57].mxu1 }
 0x334   :  { %1141 = vst [vmem:[#allocation2 + $0x1b8] sm:$0xff] %v1077_v16  ;;  %v942_v58 = vadd.f32 %v941_v27, %v2255_v44  ;;  %v943_v41 = vpop.f32.mrb[58].mxu1 }
 0x335   :  { %v1014_v21 = vmax.f32 %v940_v51, 0.0  ;;  %v944_v50 = vadd.f32 %v943_v41, %v2253_v8  ;;  %v945_v0 = vpop.f32.mrb[59].mxu1 }
 0x336   :  { %v1015_v18 = vmax.f32 %v942_v58, 0.0  ;;  %v946_v3 = vadd.f32 %v945_v0, %v2255_v44 }
 0x337   :  { %v1078_v57 = vadd.f32 %v1414_v14, %v1014_v21  ;;  %v1016_v9 = vmax.f32 %v944_v50, 0.0 }
 0x338   :  { %v1079_v59 = vadd.f32 %v1415_v29, %v1015_v18  ;;  %v1017_v62 = vmax.f32 %v946_v3, 0.0 }
 0x339   :  { %1142 = vst [vmem:[#allocation2 + $0x1c0] sm:$0xff] %v1078_v57  ;;  %v1080_v10 = vadd.f32 %v1416_v1, %v1016_v9 }
 0x33a   :  { %1143 = vst [vmem:[#allocation2 + $0x1c8] sm:$0xff] %v1079_v59  ;;  %v1081_v46 = vadd.f32 %v1417_v30, %v1017_v62  ;;  %v949_v6 = vpop.f32.mrb[60].mxu1 }
 0x33b   :  { %1144 = vst [vmem:[#allocation2 + $0x1d0] sm:$0xff] %v1080_v10  ;;  %v950_v11 = vadd.f32 %v949_v6, %v2253_v8  ;;  %v951_v31 = vpop.f32.mrb[61].mxu1 }
 0x33c   :  { %1145 = vst [vmem:[#allocation2 + $0x1d8] sm:$0xff] %v1081_v46  ;;  %v952_v5 = vadd.f32 %v951_v31, %v2255_v44  ;;  %v953_v36 = vpop.f32.mrb[62].mxu1 }
 0x33d   :  { %v1018_v13 = vmax.f32 %v950_v11, 0.0  ;;  %v954_v19 = vadd.f32 %v953_v36, %v2253_v8  ;;  %v955_v37 = vpop.f32.mrb[63].mxu1  ;;  %v1420_v8 = vld [vmem:[%s2525_s0 + $0x1f0] sm:$0xff] }
 0x33e   :  { %v1019_v22 = vmax.f32 %v952_v5, 0.0  ;;  %v956_v28 = vadd.f32 %v955_v37, %v2255_v44 }
 0x33f   :  { %v1082_v39 = vadd.f32 %v1418_v54, %v1018_v13  ;;  %v1020_v42 = vmax.f32 %v954_v19, 0.0 }
 0x340   :  { %v1083_v23 = vadd.f32 %v1419_v43, %v1019_v22  ;;  %v1021_v34 = vmax.f32 %v956_v28, 0.0 }
 0x341   :  { %1146 = vst [vmem:[#allocation2 + $0x1e0] sm:$0xff] %v1082_v39  ;;  %v1084_v44 = vadd.f32 %v1420_v8, %v1020_v42 }
 0x342   :  { %1147 = vst [vmem:[#allocation2 + $0x1e8] sm:$0xff] %v1083_v23  ;;  %v1085_v47 = vadd.f32 %v1421_v38, %v1021_v34 }
 0x343   :  { %1148 = vst [vmem:[#allocation2 + $0x1f0] sm:$0xff] %v1084_v44 }
 0x344   :  { %1149 = vst [vmem:[#allocation2 + $0x1f8] sm:$0xff] %v1085_v47 }
 0x345   :  { %1433 = shalt.err (!%p1430_p4)
}
 0x346   :  { %s1434_s20 = scalar_lea.hbm %s2532_s7, 8192 }
 0x347   :  { %p1435_p5 = scmp.ne.s32.totalorder %s2532_s7, %s1434_s20  ;;  %p1438_p6 = scmp.lt.u32.totalorder %s1434_s20, %s2532_s7 }
 0x349   :  { %p1440_p7 = pnand %p1438_p6, %p1435_p5 }
 0x34b   :  { %1443 = shalt.err (!%p1440_p7)
}
 0x34c   :  { %s1448_s23 = smov 256   ;;  %s1449_s24 = smov 16  }
 0x34d   :  { %1161 = dma.vmem_to_hbm [thread:$0]  %s1156_s11, 8192, %s2532_s7, [#allocation3], %s1448_s23, %s1448_s23, %s1449_s24  }
 0x34e   :  { %1444 = dma.done.wait [#allocation3], 8192  }
 0x34f   :  { %1445 = vsyncadd [#allocation3], 4294959104 }
 0x350   :  { %1165 = vsyncpa [#allocation3], 1 }

</bundles_post_ra>
